<compile_context>
chip_gen: v5e
topology: v5e:2x2
jax: 0.10.0
libtpu: 0.0.40
codegen_flags: <defaults>
</compile_context>

<pallas_src>
import math

import jax
import jax.numpy as jnp
from jax.experimental import pallas as pl
from jax.experimental.pallas import tpu as pltpu

# --- module hyper-parameters (from __init__) -------------------------------
H = 32            # database.config.feature_size
T2C_HID = 32      # _table_to_column_hidden_size
AGGR_HEADS = 64   # _table_to_column_aggr_heads
PRED_HEADS = 16   # _predicate_num_heads
N_PRED = 2        # len(_predicate_features) = ('predicate_filter','predicate_join')
TAB_FEAT = 3      # len(_table_features)
ONEHOT = 5        # TABLE_CLUSTERS + 1
DENSE = 8         # TABLE_DENSE_EMBEDDING_SIZE
COL_STAT = 6      # COLUMN_FEATURE_SIZE
XTAB_F = TAB_FEAT + ONEHOT + DENSE   # 16

# row offsets inside the packed "wc" weight slab (all 8-aligned)
_OFF_BPH = AGGR_HEADS                       # 64
_OFF_WPE = AGGR_HEADS + 8                   # 72
_OFF_WTF = _OFF_WPE + N_PRED * PRED_HEADS   # 104


def table_transform_kernel(xtab_ref, col_ref, wa_ref, wb_ref, wc_ref, out_ref):
    f32 = jnp.float32
    T = xtab_ref.shape[1]
    C = col_ref.shape[1]

    xtab = xtab_ref[0]                                     # (T, 16) = [tf | onehot | dense]
    col = col_ref[0]                                       # (C, 6+2+2+T) = [cs | pf | pm | c2t]
    cs = col[:, 0:COL_STAT]
    pf = col[:, COL_STAT:COL_STAT + N_PRED]
    pm = col[:, COL_STAT + N_PRED:COL_STAT + 2 * N_PRED]
    c2t = col[:, COL_STAT + 2 * N_PRED:COL_STAT + 2 * N_PRED + T]   # (C, T) edge-dst one-hot

    w_all_wide = wa_ref[0:XTAB_F, :]                       # (16, 1024)
    w_cs_tiled = wa_ref[XTAB_F:XTAB_F + COL_STAT, :]       # (6, 1024)
    w_bilinear = wb_ref[0:H * T2C_HID, :]                  # (1024, 64)
    b_fold = wb_ref[H * T2C_HID:H * T2C_HID + COL_STAT, :]  # (6, 64)
    w_ph = wc_ref[0:AGGR_HEADS, :]                         # (64, 32)
    b_ph = wc_ref[_OFF_BPH:_OFF_BPH + 1, :]                # (1, 32)
    w_pe = wc_ref[_OFF_WPE:_OFF_WPE + N_PRED * PRED_HEADS, :]  # (32, 32) folded group_fc @ w_fin
    w_tf = wc_ref[_OFF_WTF:_OFF_WTF + TAB_FEAT, :]         # (3, 32)  tail of w_fin

    # TODO(synk): AggrGATConv (gnn_column_to_table) has no provided definition;
    # bypassed via extractor_use_no_gat=True, so column_to_table_embedding == table_embedding.
    # Dropouts are identity in eval; normalization disabled.

    # fc_table_all + edge-dst gather + fc_table_to_column_heads + u_matmul_v,
    # refactored into one bilinear contraction (weights packed host-side):
    #   edge_out[e,k] = sum_{h,j} table_emb[dst(e),h] * cs_emb[e,j] * w_ttc[h, j*64+k]
    #                 + sum_j cs_emb[e,j] * b_ttc[j*64+k]
    xtab_e = jnp.dot(c2t, xtab, preferred_element_type=f32)             # (C, 16) one-hot gather
    te_wide = jnp.dot(xtab_e, w_all_wide, preferred_element_type=f32)   # (C, 1024): [e, h*32+j] = table_emb[dst(e), h]
    cs_tiled = jnp.dot(cs, w_cs_tiled, preferred_element_type=f32)      # (C, 1024): [e, h*32+j] = cs_emb[e, j]
    edge_out = (jnp.dot(te_wide * cs_tiled, w_bilinear, preferred_element_type=f32)
                + jnp.dot(cs, b_fold, preferred_element_type=f32))      # (C, 64)

    # fc_predicate_heads: LeakyReLU(0.01) then Linear(64 -> 2*16) with bias
    lrelu = jnp.where(edge_out > 0, edge_out, 0.01 * edge_out)
    ph = jnp.dot(lrelu, w_ph, preferred_element_type=f32) + b_ph        # (C, 32), [0:16]=head0 [16:32]=head1

    # _predicate_func, both heads fused on 32 lanes via VPU lane-select (exact 0/1):
    #   res[e, i*16+r] = pf[e,i] * ph[e, i*16+r] - (1 - pm[e,i]) * 65536
    lane = jax.lax.broadcasted_iota(jnp.int32, (C, N_PRED * PRED_HEADS), 1)
    head0 = lane < PRED_HEADS
    pf_w = jnp.where(head0, pf[:, 0:1], pf[:, 1:2])                     # (C, 32)
    pm_w = jnp.where(head0, pm[:, 0:1], pm[:, 1:2])                     # (C, 32), exact 0/1
    res = pf_w * ph - (1.0 - pm_w) * 65536.0                            # (C, 32)

    # dgl.function.max('out_ct','pe'): masked max over incoming edges, (C,T)-oriented
    neg = jnp.float32(-1e9)
    masked = jnp.where(c2t[:, :, None] > 0.5, res[:, None, :], neg)     # (C, T, 32)
    pe = jnp.max(masked, axis=0)                                        # (T, 32)
    pe = jnp.where(pe > -32768.0, pe, 0.0)                              # pe * (pe > -32768)

    # group_fc_predicate_embedding + fc_table_final_embedding (folded host-side)
    tf = xtab[:, 0:TAB_FEAT]                                            # origin_table_features
    out_ref[0] = (jnp.dot(pe, w_pe, preferred_element_type=f32)
                  + jnp.dot(tf, w_tf, preferred_element_type=f32))


def _pad8(a):
    r = (-a.shape[0]) % 8
    return jnp.pad(a, ((0, r), (0, 0)))


def pack_table_transform_params(params):
    """Fold / repack the original TableTransform weights into 3 dense slabs.

    Called ONCE (outside the per-call jit); the slabs are reused for every forward.
    """
    w_all, w_cs = params['w_all'], params['w_cs']
    w_ttc, b_ttc = params['w_ttc'], params['b_ttc']
    w_ph, b_ph = params['w_ph'], params['b_ph']
    w_g0, w_g1, w_fin = params['w_g0'], params['w_g1'], params['w_fin']

    # column h of fc_table_all repeated T2C_HID times -> [:, h*32+j] = w_all[:, h]
    w_all_wide = jnp.repeat(w_all, T2C_HID, axis=1)                      # (16, 1024)
    # fc_column_statistics tiled across the H table-embedding channels -> [:, h*32+j] = w_cs[:, j]
    w_cs_tiled = jnp.tile(w_cs, (1, H))                                  # (6, 1024)
    # fc_table_to_column_heads as a bilinear-form matrix: [(h*32+j), k] = w_ttc[h, j*64+k]
    w_bilinear = w_ttc.reshape(H * T2C_HID, AGGR_HEADS)                  # (1024, 64)
    # its bias folded through fc_column_statistics
    b_fold = w_cs @ b_ttc.reshape(T2C_HID, AGGR_HEADS)                   # (6, 64)
    # group_fc_predicate_embedding folded into fc_table_final_embedding
    w_pe = jnp.concatenate([w_g0 @ w_fin[0:H], w_g1 @ w_fin[H:2 * H]], axis=0)   # (32, 32)
    w_tf = w_fin[2 * H:2 * H + TAB_FEAT]                                 # (3, 32)

    wa = jnp.concatenate([w_all_wide, _pad8(w_cs_tiled)], axis=0)        # (24, 1024)
    wb = jnp.concatenate([w_bilinear, _pad8(b_fold)], axis=0)            # (1032, 64)
    wc = jnp.concatenate([w_ph, _pad8(b_ph), w_pe, _pad8(w_tf)], axis=0)  # (112, 32)
    return wa, wb, wc


@jax.jit
def table_transform(x_tab, cs, pf, pm, c2t, wa, wb, wc):
    """Batched forward: x_tab (B,T,16), cs (B,C,6), pf/pm (B,C,2), c2t (B,C,T)."""
    B, T, _ = x_tab.shape
    C = cs.shape[1]
    col_packed = jnp.concatenate([cs, pf, pm, c2t], axis=-1)             # (B, C, 10+T)
    W = col_packed.shape[-1]

    # advisory cost estimate (latency-bound custom call inside a larger graph)
    flops_i = 2 * C * (T * XTAB_F + XTAB_F * H * T2C_HID + COL_STAT * H * T2C_HID
                       + H * T2C_HID * AGGR_HEADS + COL_STAT * AGGR_HEADS
                       + AGGR_HEADS * N_PRED * PRED_HEADS) \
        + 2 * T * (N_PRED * PRED_HEADS * H + TAB_FEAT * H)
    bytes_weights = 4 * (wa.size + wb.size + wc.size)
    bytes_i = 4 * (T * XTAB_F + C * W + T * H)
    cost = pl.CostEstimate(flops=int(B * flops_i), transcendentals=0,
                           bytes_accessed=int(bytes_weights + B * bytes_i))

    in_specs = [
        pl.BlockSpec((1, T, XTAB_F), lambda b: (b, 0, 0)),
        pl.BlockSpec((1, C, W), lambda b: (b, 0, 0)),
        # weight slabs: constant block index -> VMEM-resident across the whole grid
        pl.BlockSpec(wa.shape, lambda b: (0, 0)),
        pl.BlockSpec(wb.shape, lambda b: (0, 0)),
        pl.BlockSpec(wc.shape, lambda b: (0, 0)),
    ]
    out_specs = pl.BlockSpec((1, T, H), lambda b: (b, 0, 0))

    return pl.pallas_call(
        table_transform_kernel,
        out_shape=jax.ShapeDtypeStruct((B, T, H), jnp.float32),
        grid=(B,),
        in_specs=in_specs,
        out_specs=out_specs,
        compiler_params=pltpu.CompilerParams(dimension_semantics=("parallel",)),
        cost_estimate=cost,
    )(x_tab, col_packed, wa, wb, wc)


# --- pure-JAX reference (original layer-by-layer semantics, one instance) ---
def reference(x_tab, tf, cs, pf, pm, col2tab, params):
    T = tf.shape[0]
    C = cs.shape[0]
    table_emb = x_tab @ params['w_all']
    cs_emb = cs @ params['w_cs']
    tc = (table_emb @ params['w_ttc'] + params['b_ttc']).reshape(T, T2C_HID, AGGR_HEADS)
    tc_e = tc[col2tab]                                   # edge-dst gather
    edge_out = jnp.einsum('cj,cjk->ck', cs_emb, tc_e)    # u_matmul_v
    lrelu = jnp.where(edge_out > 0, edge_out, 0.01 * edge_out)
    ph = (lrelu @ params['w_ph'] + params['b_ph']).reshape(C, N_PRED, PRED_HEADS)
    res = pf[:, :, None] * ph - (1.0 - pm[:, :, None]) * 65536.0
    pe = jnp.full((T, N_PRED, PRED_HEADS), -1e9, jnp.float32)
    pe = pe.at[col2tab].max(res)
    pe = jnp.where(pe > -32768.0, pe, 0.0)
    emb0 = pe[:, 0, :] @ params['w_g0']
    emb1 = pe[:, 1, :] @ params['w_g1']
    final_in = jnp.concatenate([emb0, emb1, tf], axis=-1)
    return final_in @ params['w_fin']


if __name__ == "__main__":
    key = jax.random.PRNGKey(0)
    keys = jax.random.split(key, 16)
    B, T, C = 2, 8, 16   # 2 plans, 8 tables, 16 columns each

    tf = jax.random.normal(keys[0], (B, T, TAB_FEAT), jnp.float32)
    oh = jax.nn.one_hot(jax.random.randint(keys[1], (B, T), 0, ONEHOT), ONEHOT).astype(jnp.float32)
    de = jax.random.normal(keys[2], (B, T, DENSE), jnp.float32)
    cs = jax.random.normal(keys[3], (B, C, COL_STAT), jnp.float32)
    pf = jax.random.uniform(keys[4], (B, C, N_PRED), jnp.float32)
    pm = (jax.random.uniform(keys[5], (B, C, N_PRED)) > 0.3).astype(jnp.float32)

    col2tab = jnp.stack([jnp.arange(C) % T, (jnp.arange(C) * 3) % T], axis=0)  # (B, C)
    c2t = jax.nn.one_hot(col2tab, T).astype(jnp.float32)    # (B, C, T) edge-dst one-hot
    x_tab = jnp.concatenate([tf, oh, de], axis=-1)          # (B, T, 16): cat before fc_table_all

    def u(k, shape, scale):
        return jax.random.uniform(k, shape, jnp.float32, -scale, scale)

    a_all = math.sqrt(3) * 2 / math.sqrt(10 + 7)            # init bound from __init__
    params = dict(
        w_all=u(keys[6], (XTAB_F, H), a_all),
        w_cs=u(keys[7], (COL_STAT, T2C_HID), 1.0 / math.sqrt(COL_STAT)),
        w_ttc=u(keys[8], (H, T2C_HID * AGGR_HEADS), 1.0 / math.sqrt(H)),
        b_ttc=u(keys[9], (1, T2C_HID * AGGR_HEADS), 1.0 / math.sqrt(H)),
        w_ph=u(keys[10], (AGGR_HEADS, N_PRED * PRED_HEADS), 1.0 / math.sqrt(AGGR_HEADS)),
        b_ph=u(keys[11], (1, N_PRED * PRED_HEADS), 1.0 / math.sqrt(AGGR_HEADS)),
        w_g0=u(keys[12], (PRED_HEADS, H), 1.0 / math.sqrt(PRED_HEADS)),
        w_g1=u(keys[13], (PRED_HEADS, H), 1.0 / math.sqrt(PRED_HEADS)),
        w_fin=u(keys[14], (N_PRED * H + TAB_FEAT, H), 1.0 / math.sqrt(N_PRED * H + TAB_FEAT)),
    )

    # one-time weight packing, hoisted out of the forward jit
    wa, wb, wc = jax.block_until_ready(pack_table_transform_params(params))

    out = table_transform(x_tab, cs, pf, pm, c2t, wa, wb, wc)
    out = jax.block_until_ready(out)
    assert out.shape == (B, T, H)

    for b in range(B):
        ref = reference(x_tab[b], tf[b], cs[b], pf[b], pm[b], col2tab[b], params)
        err = float(jnp.max(jnp.abs(out[b] - ref)))
        assert jnp.allclose(out[b], ref, atol=1e-3, rtol=1e-3), err
    print("KERNEL_OK")
</pallas_src>

<mosaic_0001>
module attributes {stable_mosaic.version = 11 : i64} {
  func.func @table_transform_kernel(%arg0: i32, %arg1: memref<1x8x16xf32, #tpu.memory_space<vmem>>, %arg2: memref<1x16x18xf32, #tpu.memory_space<vmem>>, %arg3: memref<24x1024xf32, #tpu.memory_space<vmem>>, %arg4: memref<1032x64xf32, #tpu.memory_space<vmem>>, %arg5: memref<112x32xf32, #tpu.memory_space<vmem>>, %arg6: memref<1x8x32xf32, #tpu.memory_space<vmem>>) attributes {dimension_semantics = [#tpu.dimension_semantics<parallel>], iteration_bounds = array<i64: 2>, scalar_prefetch = 0 : i64, scratch_operands = 0 : i64, tpu.core_type = #tpu.core_type<tc>, window_params = [{transform_indices = @transform_0, window_bounds = array<i64: 1, 8, 16>}, {transform_indices = @transform_1, window_bounds = array<i64: 1, 16, 18>}, {pipeline_mode = #tpu.pipeline_mode<synchronous>, transform_indices = @transform_2, window_bounds = array<i64: 24, 1024>}, {pipeline_mode = #tpu.pipeline_mode<synchronous>, transform_indices = @transform_3, window_bounds = array<i64: 1032, 64>}, {pipeline_mode = #tpu.pipeline_mode<synchronous>, transform_indices = @transform_4, window_bounds = array<i64: 112, 32>}, {transform_indices = @transform_5, window_bounds = array<i64: 1, 8, 32>}]} {
    %c0 = arith.constant 0 : index
    %c0_0 = arith.constant 0 : index
    %c0_1 = arith.constant 0 : index
    %0 = vector.load %arg1[%c0, %c0_0, %c0_1] : memref<1x8x16xf32, #tpu.memory_space<vmem>>, vector<1x8x16xf32>
    %1 = vector.shape_cast %0 : vector<1x8x16xf32> to vector<8x16xf32>
    %c0_2 = arith.constant 0 : index
    %c0_3 = arith.constant 0 : index
    %c0_4 = arith.constant 0 : index
    %2 = vector.load %arg2[%c0_2, %c0_3, %c0_4] : memref<1x16x18xf32, #tpu.memory_space<vmem>>, vector<1x16x18xf32>
    %3 = vector.shape_cast %2 : vector<1x16x18xf32> to vector<16x18xf32>
    %4 = vector.extract_strided_slice %3 {offsets = [0, 0], sizes = [16, 6], strides = [1, 1]} : vector<16x18xf32> to vector<16x6xf32>
    %5 = vector.extract_strided_slice %3 {offsets = [0, 6], sizes = [16, 2], strides = [1, 1]} : vector<16x18xf32> to vector<16x2xf32>
    %6 = vector.extract_strided_slice %3 {offsets = [0, 8], sizes = [16, 2], strides = [1, 1]} : vector<16x18xf32> to vector<16x2xf32>
    %7 = vector.extract_strided_slice %3 {offsets = [0, 10], sizes = [16, 8], strides = [1, 1]} : vector<16x18xf32> to vector<16x8xf32>
    %c0_5 = arith.constant 0 : index
    %c0_6 = arith.constant 0 : index
    %8 = vector.load %arg3[%c0_5, %c0_6] : memref<24x1024xf32, #tpu.memory_space<vmem>>, vector<16x1024xf32>
    %c16 = arith.constant 16 : index
    %c0_7 = arith.constant 0 : index
    %9 = vector.load %arg3[%c16, %c0_7] : memref<24x1024xf32, #tpu.memory_space<vmem>>, vector<6x1024xf32>
    %c0_8 = arith.constant 0 : index
    %c0_9 = arith.constant 0 : index
    %10 = vector.load %arg4[%c0_8, %c0_9] : memref<1032x64xf32, #tpu.memory_space<vmem>>, vector<1024x64xf32>
    %c1024 = arith.constant 1024 : index
    %c0_10 = arith.constant 0 : index
    %11 = vector.load %arg4[%c1024, %c0_10] : memref<1032x64xf32, #tpu.memory_space<vmem>>, vector<6x64xf32>
    %c0_11 = arith.constant 0 : index
    %c0_12 = arith.constant 0 : index
    %12 = vector.load %arg5[%c0_11, %c0_12] : memref<112x32xf32, #tpu.memory_space<vmem>>, vector<64x32xf32>
    %c64 = arith.constant 64 : index
    %c0_13 = arith.constant 0 : index
    %13 = vector.load %arg5[%c64, %c0_13] : memref<112x32xf32, #tpu.memory_space<vmem>>, vector<1x32xf32>
    %c72 = arith.constant 72 : index
    %c0_14 = arith.constant 0 : index
    %14 = vector.load %arg5[%c72, %c0_14] : memref<112x32xf32, #tpu.memory_space<vmem>>, vector<32x32xf32>
    %c104 = arith.constant 104 : index
    %c0_15 = arith.constant 0 : index
    %15 = vector.load %arg5[%c104, %c0_15] : memref<112x32xf32, #tpu.memory_space<vmem>>, vector<3x32xf32>
    %cst = arith.constant dense<0.000000e+00> : vector<16x16xf32>
    %16 = tpu.matmul %7, %1, %cst {dimension_numbers = #tpu.dot_dimension_numbers<[1], [0], [0], [1], [0, 0, 1, 1], [], []>} : vector<16x8xf32>, vector<8x16xf32>, vector<16x16xf32> -> vector<16x16xf32>
    %cst_16 = arith.constant dense<0.000000e+00> : vector<16x1024xf32>
    %17 = tpu.matmul %16, %8, %cst_16 {dimension_numbers = #tpu.dot_dimension_numbers<[1], [0], [0], [1], [0, 0, 1, 1], [], []>} : vector<16x16xf32>, vector<16x1024xf32>, vector<16x1024xf32> -> vector<16x1024xf32>
    %cst_17 = arith.constant dense<0.000000e+00> : vector<16x1024xf32>
    %18 = tpu.matmul %4, %9, %cst_17 {dimension_numbers = #tpu.dot_dimension_numbers<[1], [0], [0], [1], [0, 0, 1, 1], [], []>} : vector<16x6xf32>, vector<6x1024xf32>, vector<16x1024xf32> -> vector<16x1024xf32>
    %19 = arith.mulf %17, %18 : vector<16x1024xf32>
    %cst_18 = arith.constant dense<0.000000e+00> : vector<16x64xf32>
    %20 = tpu.matmul %19, %10, %cst_18 {dimension_numbers = #tpu.dot_dimension_numbers<[1], [0], [0], [1], [0, 0, 1, 1], [], []>} : vector<16x1024xf32>, vector<1024x64xf32>, vector<16x64xf32> -> vector<16x64xf32>
    %cst_19 = arith.constant dense<0.000000e+00> : vector<16x64xf32>
    %21 = tpu.matmul %4, %11, %cst_19 {dimension_numbers = #tpu.dot_dimension_numbers<[1], [0], [0], [1], [0, 0, 1, 1], [], []>} : vector<16x6xf32>, vector<6x64xf32>, vector<16x64xf32> -> vector<16x64xf32>
    %22 = arith.addf %20, %21 : vector<16x64xf32>
    %cst_20 = arith.constant 0.000000e+00 : f32
    %23 = vector.broadcast %cst_20 : f32 to vector<16x64xf32>
    %24 = arith.cmpf ogt, %22, %23 : vector<16x64xf32>
    %cst_21 = arith.constant 0.00999999977 : f32
    %25 = vector.broadcast %cst_21 : f32 to vector<16x64xf32>
    %26 = arith.mulf %25, %22 : vector<16x64xf32>
    %27 = arith.select %24, %22, %26 : vector<16x64xi1>, vector<16x64xf32>
    %cst_22 = arith.constant dense<0.000000e+00> : vector<16x32xf32>
    %28 = tpu.matmul %27, %12, %cst_22 {dimension_numbers = #tpu.dot_dimension_numbers<[1], [0], [0], [1], [0, 0, 1, 1], [], []>} : vector<16x64xf32>, vector<64x32xf32>, vector<16x32xf32> -> vector<16x32xf32>
    %29 = vector.broadcast %13 : vector<1x32xf32> to vector<16x32xf32>
    %30 = arith.addf %28, %29 : vector<16x32xf32>
    %31 = tpu.iota {dimensions = array<i32: 1>} : vector<16x32xi32>
    %c16_i32 = arith.constant 16 : i32
    %32 = vector.broadcast %c16_i32 : i32 to vector<16x32xi32>
    %33 = arith.cmpi slt, %31, %32 : vector<16x32xi32>
    %34 = vector.extract_strided_slice %5 {offsets = [0, 0], sizes = [16, 1], strides = [1, 1]} : vector<16x2xf32> to vector<16x1xf32>
    %35 = vector.extract_strided_slice %5 {offsets = [0, 1], sizes = [16, 1], strides = [1, 1]} : vector<16x2xf32> to vector<16x1xf32>
    %36 = vector.shape_cast %34 : vector<16x1xf32> to vector<16x1xf32>
    %37 = vector.broadcast %36 : vector<16x1xf32> to vector<16x32xf32>
    %38 = vector.shape_cast %35 : vector<16x1xf32> to vector<16x1xf32>
    %39 = vector.broadcast %38 : vector<16x1xf32> to vector<16x32xf32>
    %40 = arith.select %33, %37, %39 : vector<16x32xi1>, vector<16x32xf32>
    %41 = vector.extract_strided_slice %6 {offsets = [0, 0], sizes = [16, 1], strides = [1, 1]} : vector<16x2xf32> to vector<16x1xf32>
    %42 = vector.extract_strided_slice %6 {offsets = [0, 1], sizes = [16, 1], strides = [1, 1]} : vector<16x2xf32> to vector<16x1xf32>
    %43 = vector.shape_cast %41 : vector<16x1xf32> to vector<16x1xf32>
    %44 = vector.broadcast %43 : vector<16x1xf32> to vector<16x32xf32>
    %45 = vector.shape_cast %42 : vector<16x1xf32> to vector<16x1xf32>
    %46 = vector.broadcast %45 : vector<16x1xf32> to vector<16x32xf32>
    %47 = arith.select %33, %44, %46 : vector<16x32xi1>, vector<16x32xf32>
    %48 = arith.mulf %40, %30 : vector<16x32xf32>
    %cst_23 = arith.constant 1.000000e+00 : f32
    %49 = vector.broadcast %cst_23 : f32 to vector<16x32xf32>
    %50 = arith.subf %49, %47 : vector<16x32xf32>
    %cst_24 = arith.constant 6.553600e+04 : f32
    %51 = vector.broadcast %cst_24 : f32 to vector<16x32xf32>
    %52 = arith.mulf %50, %51 : vector<16x32xf32>
    %53 = arith.subf %48, %52 : vector<16x32xf32>
    %54 = vector.shape_cast %7 : vector<16x8xf32> to vector<16x8x1xf32>
    %cst_25 = arith.constant 5.000000e-01 : f32
    %55 = vector.broadcast %cst_25 : f32 to vector<16x8x1xf32>
    %56 = arith.cmpf ogt, %54, %55 : vector<16x8x1xf32>
    %57 = vector.shape_cast %53 : vector<16x32xf32> to vector<16x1x32xf32>
    %cst_26 = arith.constant -1.000000e+09 : f32
    %58 = vector.shape_cast %56 : vector<16x8x1xi1> to vector<16x8x1xi1>
    %59 = vector.broadcast %58 : vector<16x8x1xi1> to vector<16x8x32xi1>
    %60 = vector.shape_cast %57 : vector<16x1x32xf32> to vector<16x1x32xf32>
    %61 = vector.broadcast %60 : vector<16x1x32xf32> to vector<16x8x32xf32>
    %62 = vector.broadcast %cst_26 : f32 to vector<16x8x32xf32>
    %63 = arith.select %59, %61, %62 : vector<16x8x32xi1>, vector<16x8x32xf32>
    %cst_27 = arith.constant dense<0xFF800000> : vector<8x32xf32>
    %64 = vector.multi_reduction <maximumf>, %63, %cst_27 [0] : vector<16x8x32xf32> to vector<8x32xf32>
    %cst_28 = arith.constant -3.276800e+04 : f32
    %65 = vector.broadcast %cst_28 : f32 to vector<8x32xf32>
    %66 = arith.cmpf ogt, %64, %65 : vector<8x32xf32>
    %cst_29 = arith.constant 0.000000e+00 : f32
    %67 = vector.broadcast %cst_29 : f32 to vector<8x32xf32>
    %68 = arith.select %66, %64, %67 : vector<8x32xi1>, vector<8x32xf32>
    %69 = vector.extract_strided_slice %1 {offsets = [0, 0], sizes = [8, 3], strides = [1, 1]} : vector<8x16xf32> to vector<8x3xf32>
    %cst_30 = arith.constant dense<0.000000e+00> : vector<8x32xf32>
    %70 = tpu.matmul %68, %14, %cst_30 {dimension_numbers = #tpu.dot_dimension_numbers<[1], [0], [0], [1], [0, 0, 1, 1], [], []>} : vector<8x32xf32>, vector<32x32xf32>, vector<8x32xf32> -> vector<8x32xf32>
    %cst_31 = arith.constant dense<0.000000e+00> : vector<8x32xf32>
    %71 = tpu.matmul %69, %15, %cst_31 {dimension_numbers = #tpu.dot_dimension_numbers<[1], [0], [0], [1], [0, 0, 1, 1], [], []>} : vector<8x3xf32>, vector<3x32xf32>, vector<8x32xf32> -> vector<8x32xf32>
    %72 = arith.addf %70, %71 : vector<8x32xf32>
    %c0_32 = arith.constant 0 : index
    %c0_33 = arith.constant 0 : index
    %c0_34 = arith.constant 0 : index
    %73 = vector.load %arg6[%c0_32, %c0_33, %c0_34] : memref<1x8x32xf32, #tpu.memory_space<vmem>>, vector<1x8x32xf32>
    %74 = vector.shape_cast %73 : vector<1x8x32xf32> to vector<8x32xf32>
    %75 = vector.shape_cast %72 : vector<8x32xf32> to vector<1x8x32xf32>
    tpu.vector_store %arg6[%c0_32, %c0_33, %c0_34], %75 {strides = array<i32>} : memref<1x8x32xf32, #tpu.memory_space<vmem>>, vector<1x8x32xf32>,
    return
  }
  func.func @transform_0(%arg0: i32) -> (i32, i32, i32) {
    %c0_i32 = arith.constant 0 : i32
    %c0_i32_0 = arith.constant 0 : i32
    %c0_i32_1 = arith.constant 0 : i32
    return %arg0, %c0_i32, %c0_i32_0 : i32, i32, i32
  }
  func.func @transform_1(%arg0: i32) -> (i32, i32, i32) {
    %c0_i32 = arith.constant 0 : i32
    %c0_i32_0 = arith.constant 0 : i32
    %c0_i32_1 = arith.constant 0 : i32
    return %arg0, %c0_i32, %c0_i32_0 : i32, i32, i32
  }
  func.func @transform_2(%arg0: i32) -> (i32, i32) {
    %c0_i32 = arith.constant 0 : i32
    %c0_i32_0 = arith.constant 0 : i32
    %c0_i32_1 = arith.constant 0 : i32
    return %c0_i32, %c0_i32_0 : i32, i32
  }
  func.func @transform_3(%arg0: i32) -> (i32, i32) {
    %c0_i32 = arith.constant 0 : i32
    %c0_i32_0 = arith.constant 0 : i32
    %c0_i32_1 = arith.constant 0 : i32
    return %c0_i32, %c0_i32_0 : i32, i32
  }
  func.func @transform_4(%arg0: i32) -> (i32, i32) {
    %c0_i32 = arith.constant 0 : i32
    %c0_i32_0 = arith.constant 0 : i32
    %c0_i32_1 = arith.constant 0 : i32
    return %c0_i32, %c0_i32_0 : i32, i32
  }
  func.func @transform_5(%arg0: i32) -> (i32, i32, i32) {
    %c0_i32 = arith.constant 0 : i32
    %c0_i32_0 = arith.constant 0 : i32
    %c0_i32_1 = arith.constant 0 : i32
    return %arg0, %c0_i32, %c0_i32_0 : i32, i32, i32
  }
}

</mosaic_0001>

<bundles_post_ra>
// kernel: table_transform.1
= control target key start
LH: loop header
LB: loop body
LE: loop exit
PB: predicated region body
PF: predicated region fallthrough
CT: control target
= control target key end

     0   :  { %10 = vsyncpa [#allocation3], 0  ;;  %s2586_s0 = inlined_call_operand.vmem [shape: f32[2,8,16], index: 0, kind: input, shape index: {}]   ;;  %s2587_s1 = inlined_call_operand.vmem [shape: f32[2,16,18], index: 1, kind: input, shape index: {}]   ;;  %s2588_s2 = inlined_call_operand.vmem [shape: f32[24,1024], index: 2, kind: input, shape index: {}]   ;;  %s2589_s3 = inlined_call_operand.vmem [shape: f32[1032,64], index: 3, kind: input, shape index: {}]   ;;  %s2590_s4 = inlined_call_operand.vmem [shape: f32[112,32], index: 4, kind: input, shape index: {}]   ;;  %s2591_s5 = inlined_call_operand.hbm [shape: f32[2,8,32], index: 5, kind: output, shape index: {}]  }
   0x1   :  { %12 = vsyncpa [#allocation3 + $0x1], 0  ;;  %s1774_s18 = smov 0   ;;  %s1776_s19 = smov 0  }
   0x2   :  { %s1778_s20 = smov 0   ;;  %s1780_s21 = smov 0  }
   0x3 LB: > { %s1795_s22 = sadd.s32 4294967295, %s1737_s21   ;;  %s1556_s23 = sadd.s32 4294967294, %s1737_s21   ;;  %s1737_s21 = sphi %s1780_s21, %s2598_s21   ;;  %s1733_s20 = sphi %s1778_s20, %s2597_s20   ;;  %s1729_s19 = sphi %s1776_s19, %s2596_s19   ;;  %s1725_s18 = sphi %s1774_s18, %s2595_s18  }
   0x4   : > { %s1799_s24 = sadd.s32 1, %s1737_s21   ;;  %s140_s25 = sadd.s32 1, %s1733_s20 }
   0x5   : > { %s137_s26 = ssub.s32 %s1737_s21, %s1799_s24  ;;  %p150_p0 = scmp.ne.s32.totalorder %s1733_s20, %s1729_s19 }
   0x6   : > { %p138_p1 = scmp.eq.s32.totalorder %s137_s26, 0  ;;  %p151_p2 = scmp.eq.s32.totalorder %s1795_s22, 1 }
   0x7   : > { %p156_p3 = scmp.ne.s32.totalorder %s1729_s19, %s1725_s18  ;;  %p157_p4 = scmp.eq.s32.totalorder %s1556_s23, 1 }
   0x8   : > { %s1810_s27 = scalar_select %p138_p1, %s1733_s20, %s140_s25  }
   0x9   : > { %p1812_p5 = por %p151_p2, %p150_p0  ;;  %p1816_p6 = por %p157_p4, %p156_p3 }
   0xa   : > { %p1559_p7 = scmp.ge.s32.totalorder %s1737_s21, 1  ;;  %p199_p8 = scmp.lt.s32.totalorder %s1737_s21, 3 }
   0xc   : > { %p200_p9 = pnand %p1559_p7, %p199_p8 }
   0xd   : > { %p231_p10 = scmp.lt.s32.totalorder (!%p200_p9), %s1795_s22, 1  ;;  %s1739_s10 = smov (!%p200_p9), 118  }
   0xe   : > { %203 = sbr.rel (%p200_p9) target bundleno = 891 (0x37b), region = 40  ;;  %s228_s23 = sand.u32 (!%p200_p9), 1, %s1729_s19  }
   0xf   : > { %s1560_s25 = sshll.u32 (!%p200_p9), %s228_s23, 3  ;;  %s1615_s26 = sshll.u32 (!%p200_p9), %s1795_s22, 3 }
  0x10   : > { %s1480_s7 = scalar_lea.hbm (!%p200_p9), %s2591_s5, %s1615_s26  ;;  %s230_s8 = scalar_lea.vmem (!%p200_p9), [#allocation2], %s1560_s25 }
  0x11   : > { %s1695_s16 = scalar_lea.hbm (!%p200_p9), %s2591_s5, 16 }
  0x13   : > { %s232_s30 = scalar_select %p231_p10, %s1795_s22, 1  ;;  %v251_v3 = vld [vmem:[%s2588_s2 + $0x40] sm:$0xff]  ;;  %v252_v4 = vld [vmem:[%s2588_s2 + $0x48] sm:$0xff]  ;;  %v253_v5 = vld [vmem:[%s2588_s2 + $0x50] sm:$0xff]  ;;  %vm416_vm0 = vcmask 64512   ;;  %vm444_vm1 = vcmask 130048  }
  0x14   : > { %465 = vmatpush.msra.mxu1 %v251_v3  ;;  %488 = vmatpush.msra.mxu2 %v252_v4  ;;  %v254_v6 = vld [vmem:[%s2588_s2 + $0x58] sm:$0xff]  ;;  %v243_v9 = vld [vmem:[%s2588_s2] sm:$0xff]  ;;  %v244_v10 = vld [vmem:[%s2588_s2 + $0x8] sm:$0xff]  ;;  %vm640_vm2 = vcmask 1045504   ;;  %vm635_vm3 = vcmask 48128   ;;  %vm1082_vm5 = vcmask 523264  }
  0x15   : > { %s1618_s6 = sshll.u32 %s232_s30, 4  ;;  %s1561_s11 = sshll.u32 %s232_s30, 3  ;;  %511 = vmatpush.msra.mxu3 %v253_v5  ;;  %v245_v11 = vld [vmem:[%s2588_s2 + $0x10] sm:$0xff]  ;;  %v246_v12 = vld [vmem:[%s2588_s2 + $0x18] sm:$0xff]  ;;  %v256_v13 = vld [vmem:[%s2588_s2 + $0x68] sm:$0xff]  ;;  %vm1421_vm7 = vcmask 1042432  }
  0x16   : > { %s239_s9 = scalar_lea.vmem %s2587_s1, %s1618_s6  ;;  %s1836_s14 = scalar_lea.vmem %s2586_s0, %s1561_s11  ;;  %466 = vmatpush.msra.mxu1 %v243_v9  ;;  %489 = vmatpush.msra.mxu2 %v244_v10  ;;  %v255_v14 = vld [vmem:[%s2588_s2 + $0x60] sm:$0xff]  ;;  %v248_v15 = vld [vmem:[%s2588_s2 + $0x28] sm:$0xff]  ;;  %v257_v16 = vld [vmem:[%s2588_s2 + $0x70] sm:$0xff]  ;;  %vm1417_vm8 = vcmask 23552  }
  0x17   : > { %v1827_v0 = vld [vmem:[%s239_s9] sm:$0xff]  ;;  %v1830_v1 = vld [vmem:[%s239_s9 + $0x8] sm:$0xff]  ;;  %512 = vmatpush.msra.mxu3 %v245_v11  ;;  %v258_v18 = vld [vmem:[%s2588_s2 + $0x78] sm:$0xff]  ;;  %s1482_s9 = sshll.u32 %s230_s8, 4  ;;  %s1470_s11 = scalar_lea.sflag [#allocation3], %s228_s23  ;;  %s1483_s9 = int_to_ptr.vmem [resolvable:$true] %s1482_s9 }
  0x18   : > { %412 = vrot.lane.b32.xlu0 %v1827_v0, %s1739_s10  ;;  %v240_v2 = vld [vmem:[%s1836_s14] sm:$0xff]  ;;  %580 = vmatpush.msrb.mxu2 %v256_v13  ;;  %v249_v19 = vld [vmem:[%s2588_s2 + $0x30] sm:$0xff]  ;;  %v250_v20 = vld [vmem:[%s2588_s2 + $0x38] sm:$0xff] }
  0x19   : > { %436 = vmatpush.msra.mxu0 %v240_v2  ;;  %557 = vmatpush.msrb.mxu1 %v255_v14  ;;  %v247_v17 = vld [vmem:[%s2588_s2 + $0x20] sm:$0xff]  ;;  %v260_v22 = vld [vmem:[%s2588_s2 + $0x88] sm:$0x3f]  ;;  %v261_v24 = vld [vmem:[%s2588_s2 + $0x90] sm:$0x3f] }
  0x1a   : > { %581 = vmatpush.msrb.mxu2 %v248_v15  ;;  %603 = vmatpush.msrb.mxu3 %v257_v16  ;;  %v259_v23 = vld [vmem:[%s2588_s2 + $0x80] sm:$0x3f]  ;;  %v262_v25 = vld [vmem:[%s2588_s2 + $0x98] sm:$0x3f]  ;;  %v264_v27 = vld [vmem:[%s2588_s2 + $0xa8] sm:$0x3f] }
  0x1b   : > { %534 = vmatpush.msrb.mxu0 %v254_v6  ;;  %558 = vmatpush.msrb.mxu1 %v247_v17  ;;  %v263_v28 = vld [vmem:[%s2588_s2 + $0xa0] sm:$0x3f]  ;;  %v265_v29 = vld [vmem:[%s2588_s2 + $0xb0] sm:$0x3f]  ;;  %v266_v30 = vld [vmem:[%s2588_s2 + $0xb8] sm:$0x3f] }
  0x1c   : > { %604 = vmatpush.msrb.mxu3 %v249_v19  ;;  %v395_v31 = vld [vmem:[%s2589_s3 + $0x400] sm:$0x3f]  ;;  %v282_v32 = vld [vmem:[%s2589_s3 + $0x78] sm:$0xff]  ;;  %v281_v35 = vld [vmem:[%s2589_s3 + $0x70] sm:$0xff] }
  0x1d   : > { %535 = vmatpush.msrb.mxu0 %v246_v12  ;;  %v298_v33 = vld [vmem:[%s2589_s3 + $0xf8] sm:$0xff]  ;;  %v297_v36 = vld [vmem:[%s2589_s3 + $0xf0] sm:$0xff]  ;;  %v280_v38 = vld [vmem:[%s2589_s3 + $0x68] sm:$0xff] }
  0x1e   : > { %v314_v34 = vld [vmem:[%s2589_s3 + $0x178] sm:$0xff]  ;;  %v313_v37 = vld [vmem:[%s2589_s3 + $0x170] sm:$0xff]  ;;  %v296_v39 = vld [vmem:[%s2589_s3 + $0xe8] sm:$0xff] }
  0x1f   : > { %v312_v40 = vld [vmem:[%s2589_s3 + $0x168] sm:$0xff]  ;;  %v279_v41 = vld [vmem:[%s2589_s3 + $0x60] sm:$0xff]  ;;  %v278_v42 = vld [vmem:[%s2589_s3 + $0x58] sm:$0xff] }
  0x20   : > { %414 = vrot.lane.b32.xlu0 %v1830_v1, %s1739_s10  ;;  %v277_v43 = vld [vmem:[%s2589_s3 + $0x50] sm:$0xff]  ;;  %v330_v44 = vld [vmem:[%s2589_s3 + $0x1f8] sm:$0xff]  ;;  %v328_v46 = vld [vmem:[%s2589_s3 + $0x1e8] sm:$0xff]  ;;  %s1484_s10 = sshll.u32 %s1480_s7, 4  ;;  %s1485_s10 = int_to_ptr.hbm [resolvable:$true] %s1484_s10 }
  0x21   : > { %v329_v45 = vld [vmem:[%s2589_s3 + $0x1f0] sm:$0xff]  ;;  %v327_v47 = vld [vmem:[%s2589_s3 + $0x1e0] sm:$0xff]  ;;  %v326_v48 = vld [vmem:[%s2589_s3 + $0x1d8] sm:$0xff]  ;;  %s1689_s12 = sshra.s32 %s1485_s10, 4  ;;  %s1690_s12 = int_to_ptr.hbm [resolvable:$true] %s1689_s12 }
  0x22   : > { %v325_v49 = vld [vmem:[%s2589_s3 + $0x1d0] sm:$0xff]  ;;  %v276_v50 = vld [vmem:[%s2589_s3 + $0x48] sm:$0xff]  ;;  %v295_v51 = vld [vmem:[%s2589_s3 + $0xe0] sm:$0xff]  ;;  %s1691_s13 = scalar_lea.hbm %s1690_s12, 8  ;;  %p1696_p0 = scmp.lt.s32.totalorder %s1690_s12, %s2591_s5 }
  0x23   : > { %v311_v52 = vld [vmem:[%s2589_s3 + $0x160] sm:$0xff]  ;;  %v324_v53 = vld [vmem:[%s2589_s3 + $0x1c8] sm:$0xff]  ;;  %v294_v55 = vld [vmem:[%s2589_s3 + $0xd8] sm:$0xff]  ;;  %p1692_p11 = scmp.ne.s32.totalorder %s1690_s12, %s1691_s13  ;;  %p1697_p1 = scmp.lt.s32.totalorder %s1695_s16, %s1691_s13 }
  0x24   : > { %v275_v54 = vld [vmem:[%s2589_s3 + $0x40] sm:$0xff]  ;;  %v310_v56 = vld [vmem:[%s2589_s3 + $0x158] sm:$0xff]  ;;  %v293_v59 = vld [vmem:[%s2589_s3 + $0xd0] sm:$0xff] }
  0x25   : > { %v323_v57 = vld [vmem:[%s2589_s3 + $0x1c0] sm:$0xff]  ;;  %v274_v58 = vld [vmem:[%s2589_s3 + $0x38] sm:$0xff]  ;;  %v309_v60 = vld [vmem:[%s2589_s3 + $0x150] sm:$0xff]  ;;  %p1693_p12 = pnand %p1692_p11, %p1812_p5  ;;  %p1698_p2 = por %p1697_p1, %p1696_p0 }
  0x26   : > { %v322_v61 = vld [vmem:[%s2589_s3 + $0x1b8] sm:$0xff]  ;;  %v273_v62 = vld [vmem:[%s2589_s3 + $0x30] sm:$0xff]  ;;  %v292_v63 = vld [vmem:[%s2589_s3 + $0xc8] sm:$0xff] }
  0x27   : > { %v308_v2 = vld [vmem:[%s2589_s3 + $0x148] sm:$0xff]  ;;  %v321_v3 = vld [vmem:[%s2589_s3 + $0x1b0] sm:$0xff]  ;;  %v291_v5 = vld [vmem:[%s2589_s3 + $0xc0] sm:$0xff]  ;;  %p1694_p13 = pneg %p1693_p12 }
  0x28   : > { %v272_v4 = vld [vmem:[%s2589_s3 + $0x28] sm:$0xff]  ;;  %v307_v6 = vld [vmem:[%s2589_s3 + $0x140] sm:$0xff]  ;;  %v290_v9 = vld [vmem:[%s2589_s3 + $0xb8] sm:$0xff] }
  0x29   : > { %v306_v10 = vld [vmem:[%s2589_s3 + $0x138] sm:$0xff]  ;;  %v319_v11 = vld [vmem:[%s2589_s3 + $0x1a0] sm:$0xff]  ;;  %v289_v13 = vld [vmem:[%s2589_s3 + $0xb0] sm:$0xff]  ;;  %p1699_p3 = pnand %p1698_p2, %p1694_p13 }
  0x2a   : > { %v270_v12 = vld [vmem:[%s2589_s3 + $0x18] sm:$0xff]  ;;  %v305_v14 = vld [vmem:[%s2589_s3 + $0x130] sm:$0xff]  ;;  %v288_v17 = vld [vmem:[%s2589_s3 + $0xa8] sm:$0xff] }
  0x2b   : > { %v318_v15 = vld [vmem:[%s2589_s3 + $0x198] sm:$0xff]  ;;  %v269_v16 = vld [vmem:[%s2589_s3 + $0x10] sm:$0xff] }
  0x2c   : > { %v317_v19 = vld [vmem:[%s2589_s3 + $0x190] sm:$0xff] }
  0x8a   : > { %v413_v7 = vpop.permute.xlu0 %412 }
  0x8b   : > { %1564 = vmatmul.msk.f32.vlgmr.msra.gmra.mxu0 %vm416_vm0, %v413_v7  ;;  %v320_v7 = vld [vmem:[%s2589_s3 + $0x1a8] sm:$0xff] }
  0x8c   : > { %626 = vmatpush.msra.mxu0 %v258_v18  ;;  %v304_v18 = vld [vmem:[%s2589_s3 + $0x128] sm:$0xff] }
  0x8e   : > { %627 = vmatpush.msra.mxu0 %v250_v20  ;;  %v268_v20 = vld [vmem:[%s2589_s3 + $0x8] sm:$0xff] }
  0x92   : > { %v415_v8 = vpop.permute.xlu0 %414 }
  0x93   : > { %1565 = vmatmul.msk.f32.gmra.mxu0 %vm416_vm0, %v415_v8  ;;  %v271_v8 = vld [vmem:[%s2589_s3 + $0x20] sm:$0xff] }
 0x108   : > { %v438_v21 = vpop.f32.mrf.mxu0 }
 0x109   : > { %1566 = vmatmul.msk.f32.vlgmr.msra.gmra.mxu1 %vm444_vm1, %v438_v21  ;;  %1568 = vmatmul.msk.f32.vlgmr.msra.gmra.mxu2 %vm444_vm1, %v438_v21 }
 0x10a   : > { %1570 = vmatmul.msk.f32.vlgmr.msra.gmra.mxu3 %vm444_vm1, %v438_v21  ;;  %1572 = vmatmul.msk.f32.vlgmr.msrb.gmra.mxu0 %vm444_vm1, %v438_v21 }
 0x10b   : > { %1585 = vmatpush.msk.msra.mxu2 %vm640_vm2, %v260_v22  ;;  %1582 = vmatpush.msk.msra.mxu1 %vm640_vm2, %v259_v23  ;;  %v303_v22 = vld [vmem:[%s2589_s3 + $0x120] sm:$0xff]  ;;  %v316_v23 = vld [vmem:[%s2589_s3 + $0x188] sm:$0xff] }
 0x10c   : > { %1588 = vmatpush.msk.msra.mxu3 %vm640_vm2, %v261_v24  ;;  %1591 = vmatpush.msk.msrb.mxu0 %vm640_vm2, %v262_v25  ;;  %v267_v24 = vld [vmem:[%s2589_s3] sm:$0xff]  ;;  %v286_v25 = vld [vmem:[%s2589_s3 + $0x98] sm:$0xff] }
 0x110   : > { %v441_v26 = vpop.f32.mrf.mxu0 }
 0x111   : > { %1567 = vmatmul.msk.f32.gmra.mxu1 %vm444_vm1, %v441_v26  ;;  %1569 = vmatmul.msk.f32.gmra.mxu2 %vm444_vm1, %v441_v26 }
 0x112   : > { %1571 = vmatmul.msk.f32.gmra.mxu3 %vm444_vm1, %v441_v26  ;;  %1573 = vmatmul.msk.f32.gmra.mxu0 %vm444_vm1, %v441_v26 }
 0x119   : > { %1574 = vmatmul.msk.f32.vlgmr.msrb.gmra.mxu1 %vm444_vm1, %v438_v21  ;;  %1576 = vmatmul.msk.f32.vlgmr.msrb.gmra.mxu2 %vm444_vm1, %v438_v21 }
 0x11a   : > { %1578 = vmatmul.msk.f32.vlgmr.msrb.gmra.mxu3 %vm444_vm1, %v438_v21  ;;  %1580 = vmatmul.msk.f32.vlgmr.msra.gmra.mxu0 %vm444_vm1, %v438_v21  ;;  %v287_v21 = vld [vmem:[%s2589_s3 + $0xa0] sm:$0xff] }
 0x11b   : > { %1597 = vmatpush.msk.msrb.mxu2 %vm640_vm2, %v264_v27  ;;  %1594 = vmatpush.msk.msrb.mxu1 %vm640_vm2, %v263_v28  ;;  %v315_v27 = vld [vmem:[%s2589_s3 + $0x180] sm:$0xff]  ;;  %v346_v28 = vld [vmem:[%s2589_s3 + $0x278] sm:$0xff] }
 0x11c   : > { %1600 = vmatpush.msk.msrb.mxu3 %vm640_vm2, %v265_v29  ;;  %1603 = vmatpush.msk.msra.mxu0 %vm640_vm2, %v266_v30  ;;  %v394_v29 = vld [vmem:[%s2589_s3 + $0x3f8] sm:$0xff]  ;;  %v285_v30 = vld [vmem:[%s2589_s3 + $0x90] sm:$0xff] }
 0x121   : > { %1575 = vmatmul.msk.f32.gmra.mxu1 %vm444_vm1, %v441_v26  ;;  %1577 = vmatmul.msk.f32.gmra.mxu2 %vm444_vm1, %v441_v26 }
 0x122   : > { %1579 = vmatmul.msk.f32.gmra.mxu3 %vm444_vm1, %v441_v26  ;;  %1581 = vmatmul.msk.f32.gmra.mxu0 %vm444_vm1, %v441_v26  ;;  %v302_v26 = vld [vmem:[%s2589_s3 + $0x118] sm:$0xff] }
 0x129   : > { %1583 = vmatmul.msk.f32.vlgmr.msra.gmra.mxu1 %vm635_vm3, %v1827_v0  ;;  %1586 = vmatmul.msk.f32.vlgmr.msra.gmra.mxu2 %vm635_vm3, %v1827_v0 }
 0x12a   : > { %1589 = vmatmul.msk.f32.vlgmr.msra.gmra.mxu3 %vm635_vm3, %v1827_v0  ;;  %1592 = vmatmul.msk.f32.vlgmr.msrb.gmra.mxu0 %vm635_vm3, %v1827_v0 }
 0x12b   : > { %1606 = vmatpush.msk.msra.mxu1 %vm640_vm2, %v395_v31  ;;  %891 = vmatpush.msra.mxu2 %v282_v32  ;;  %v301_v31 = vld [vmem:[%s2589_s3 + $0x110] sm:$0xff]  ;;  %vm1383_vm2 = vcmask 261120  }
 0x12c   : > { %914 = vmatpush.msra.mxu3 %v298_v33  ;;  %937 = vmatpush.msrb.mxu0 %v314_v34  ;;  %v345_v32 = vld [vmem:[%s2589_s3 + $0x270] sm:$0xff]  ;;  %v284_v34 = vld [vmem:[%s2589_s3 + $0x88] sm:$0xff] }
 0x12d   : > { %892 = vmatpush.msra.mxu2 %v281_v35  ;;  %v393_v33 = vld [vmem:[%s2589_s3 + $0x3f0] sm:$0xff]  ;;  %v300_v35 = vld [vmem:[%s2589_s3 + $0x108] sm:$0xff] }
 0x12e   : > { %915 = vmatpush.msra.mxu3 %v297_v36  ;;  %938 = vmatpush.msrb.mxu0 %v313_v37  ;;  %v344_v36 = vld [vmem:[%s2589_s3 + $0x268] sm:$0xff] }
 0x12f   : > { %893 = vmatpush.msra.mxu2 %v280_v38  ;;  %v392_v37 = vld [vmem:[%s2589_s3 + $0x3e8] sm:$0xff]  ;;  %v283_v38 = vld [vmem:[%s2589_s3 + $0x80] sm:$0xff] }
 0x130   : > { %916 = vmatpush.msra.mxu3 %v296_v39  ;;  %939 = vmatpush.msrb.mxu0 %v312_v40  ;;  %v299_v39 = vld [vmem:[%s2589_s3 + $0x100] sm:$0xff] }
 0x131   : > { %1584 = vmatmul.msk.f32.gmra.mxu1 %vm635_vm3, %v1830_v1  ;;  %1587 = vmatmul.msk.f32.gmra.mxu2 %vm635_vm3, %v1830_v1  ;;  %v343_v40 = vld [vmem:[%s2589_s3 + $0x260] sm:$0xff] }
 0x132   : > { %1590 = vmatmul.msk.f32.gmra.mxu3 %vm635_vm3, %v1830_v1  ;;  %1593 = vmatmul.msk.f32.gmra.mxu0 %vm635_vm3, %v1830_v1 }
 0x133   : > { %894 = vmatpush.msra.mxu2 %v279_v41  ;;  %917 = vmatpush.msra.mxu3 %v295_v51  ;;  %v362_v41 = vld [vmem:[%s2589_s3 + $0x2f8] sm:$0xff]  ;;  %v389_v51 = vld [vmem:[%s2589_s3 + $0x3d0] sm:$0xff] }
 0x134   : > { %940 = vmatpush.msrb.mxu0 %v311_v52 }
 0x135   : > { %895 = vmatpush.msra.mxu2 %v278_v42  ;;  %918 = vmatpush.msra.mxu3 %v294_v55  ;;  %v378_v42 = vld [vmem:[%s2589_s3 + $0x378] sm:$0xff]  ;;  %v375_v55 = vld [vmem:[%s2589_s3 + $0x360] sm:$0xff] }
 0x136   : > { %941 = vmatpush.msrb.mxu0 %v310_v56 }
 0x137   : > { %896 = vmatpush.msra.mxu2 %v277_v43  ;;  %919 = vmatpush.msra.mxu3 %v293_v59  ;;  %v391_v43 = vld [vmem:[%s2589_s3 + $0x3e0] sm:$0xff]  ;;  %v358_v59 = vld [vmem:[%s2589_s3 + $0x2d8] sm:$0xff] }
 0x138   : > { %942 = vmatpush.msrb.mxu0 %v309_v60  ;;  %v374_v60 = vld [vmem:[%s2589_s3 + $0x358] sm:$0xff] }
 0x139   : > { %1595 = vmatmul.msk.f32.vlgmr.msrb.gmra.mxu1 %vm635_vm3, %v1827_v0  ;;  %1598 = vmatmul.msk.f32.vlgmr.msrb.gmra.mxu2 %vm635_vm3, %v1827_v0 }
 0x13a   : > { %1601 = vmatmul.msk.f32.vlgmr.msrb.gmra.mxu3 %vm635_vm3, %v1827_v0  ;;  %1604 = vmatmul.msk.f32.vlgmr.msra.gmra.mxu0 %vm635_vm3, %v1827_v0 }
 0x13b   : > { %960 = vmatpush.msrb.mxu1 %v330_v44  ;;  %897 = vmatpush.msra.mxu2 %v276_v50  ;;  %v342_v44 = vld [vmem:[%s2589_s3 + $0x258] sm:$0xff]  ;;  %v376_v50 = vld [vmem:[%s2589_s3 + $0x368] sm:$0xff] }
 0x13c   : > { %920 = vmatpush.msra.mxu3 %v292_v63  ;;  %943 = vmatpush.msrb.mxu0 %v308_v2  ;;  %v357_v63 = vld [vmem:[%s2589_s3 + $0x2d0] sm:$0xff] }
 0x13d   : > { %961 = vmatpush.msrb.mxu1 %v329_v45  ;;  %898 = vmatpush.msra.mxu2 %v275_v54  ;;  %v361_v45 = vld [vmem:[%s2589_s3 + $0x2f0] sm:$0xff]  ;;  %v359_v54 = vld [vmem:[%s2589_s3 + $0x2e0] sm:$0xff] }
 0x13e   : > { %921 = vmatpush.msra.mxu3 %v291_v5  ;;  %944 = vmatpush.msrb.mxu0 %v307_v6  ;;  %v373_v2 = vld [vmem:[%s2589_s3 + $0x350] sm:$0xff]  ;;  %v356_v6 = vld [vmem:[%s2589_s3 + $0x2c8] sm:$0xff] }
 0x13f   : > { %962 = vmatpush.msrb.mxu1 %v328_v46  ;;  %899 = vmatpush.msra.mxu2 %v274_v58  ;;  %v377_v46 = vld [vmem:[%s2589_s3 + $0x370] sm:$0xff]  ;;  %v339_v58 = vld [vmem:[%s2589_s3 + $0x240] sm:$0xff] }
 0x140   : > { %922 = vmatpush.msra.mxu3 %v290_v9  ;;  %945 = vmatpush.msrb.mxu0 %v306_v10  ;;  %v337_v5 = vld [vmem:[%s2589_s3 + $0x230] sm:$0xff] }
 0x141   : > { %1596 = vmatmul.msk.f32.gmra.mxu1 %vm635_vm3, %v1830_v1  ;;  %1599 = vmatmul.msk.f32.gmra.mxu2 %vm635_vm3, %v1830_v1  ;;  %v385_v9 = vld [vmem:[%s2589_s3 + $0x3b0] sm:$0xff] }
 0x142   : > { %1602 = vmatmul.msk.f32.gmra.mxu3 %vm635_vm3, %v1830_v1  ;;  %1605 = vmatmul.msk.f32.gmra.mxu0 %vm635_vm3, %v1830_v1 }
 0x143   : > { %963 = vmatpush.msrb.mxu1 %v327_v47  ;;  %900 = vmatpush.msra.mxu2 %v273_v62  ;;  %v390_v47 = vld [vmem:[%s2589_s3 + $0x3d8] sm:$0xff] }
 0x144   : > { %923 = vmatpush.msra.mxu3 %v289_v13  ;;  %946 = vmatpush.msrb.mxu0 %v305_v14  ;;  %v338_v62 = vld [vmem:[%s2589_s3 + $0x238] sm:$0xff]  ;;  %v371_v13 = vld [vmem:[%s2589_s3 + $0x340] sm:$0xff] }
 0x145   : > { %964 = vmatpush.msrb.mxu1 %v326_v48  ;;  %901 = vmatpush.msra.mxu2 %v272_v4  ;;  %v341_v48 = vld [vmem:[%s2589_s3 + $0x250] sm:$0xff] }
 0x146   : > { %924 = vmatpush.msra.mxu3 %v288_v17  ;;  %947 = vmatpush.msrb.mxu0 %v304_v18  ;;  %v354_v17 = vld [vmem:[%s2589_s3 + $0x2b8] sm:$0xff] }
 0x147   : > { %965 = vmatpush.msrb.mxu1 %v325_v49  ;;  %902 = vmatpush.msra.mxu2 %v271_v8  ;;  %v360_v49 = vld [vmem:[%s2589_s3 + $0x2e8] sm:$0xff]  ;;  %v370_v18 = vld [vmem:[%s2589_s3 + $0x338] sm:$0xff] }
 0x148   : > { %925 = vmatpush.msra.mxu3 %v287_v21  ;;  %948 = vmatpush.msrb.mxu0 %v303_v22  ;;  %v353_v21 = vld [vmem:[%s2589_s3 + $0x2b0] sm:$0xff] }
 0x149   : > { %1607 = vmatmul.msk.f32.vlgmr.msra.gmra.mxu1 %vm635_vm3, %v1827_v0  ;;  %903 = vmatpush.msra.mxu2 %v270_v12  ;;  %v355_v12 = vld [vmem:[%s2589_s3 + $0x2c0] sm:$0xff]  ;;  %v369_v22 = vld [vmem:[%s2589_s3 + $0x330] sm:$0xff] }
 0x14a   : > { %966 = vmatpush.msrb.mxu1 %v324_v53  ;;  %926 = vmatpush.msra.mxu3 %v286_v25  ;;  %v340_v53 = vld [vmem:[%s2589_s3 + $0x248] sm:$0xff]  ;;  %v333_v25 = vld [vmem:[%s2589_s3 + $0x210] sm:$0xff] }
 0x14b   : > { %904 = vmatpush.msra.mxu2 %v269_v16  ;;  %949 = vmatpush.msrb.mxu0 %v302_v26  ;;  %v335_v16 = vld [vmem:[%s2589_s3 + $0x220] sm:$0xff]  ;;  %v352_v26 = vld [vmem:[%s2589_s3 + $0x2a8] sm:$0xff] }
 0x14c   : > { %967 = vmatpush.msrb.mxu1 %v323_v57  ;;  %927 = vmatpush.msra.mxu3 %v285_v30  ;;  %v388_v57 = vld [vmem:[%s2589_s3 + $0x3c8] sm:$0xff] }
 0x14d   : > { %905 = vmatpush.msra.mxu2 %v268_v20  ;;  %950 = vmatpush.msrb.mxu0 %v301_v31  ;;  %v334_v20 = vld [vmem:[%s2589_s3 + $0x218] sm:$0xff]  ;;  %v332_v31 = vld [vmem:[%s2589_s3 + $0x208] sm:$0xff] }
 0x14e   : > { %968 = vmatpush.msrb.mxu1 %v322_v61  ;;  %928 = vmatpush.msra.mxu3 %v284_v34  ;;  %v387_v61 = vld [vmem:[%s2589_s3 + $0x3c0] sm:$0xff] }
 0x14f   : > { %906 = vmatpush.msra.mxu2 %v267_v24  ;;  %951 = vmatpush.msrb.mxu0 %v300_v35  ;;  %v380_v35 = vld [vmem:[%s2589_s3 + $0x388] sm:$0xff] }
 0x150   : > { %969 = vmatpush.msrb.mxu1 %v321_v3  ;;  %929 = vmatpush.msra.mxu3 %v283_v38  ;;  %v386_v3 = vld [vmem:[%s2589_s3 + $0x3b8] sm:$0xff] }
 0x151   : > { %1608 = vmatmul.msk.f32.gmra.mxu1 %vm635_vm3, %v1830_v1  ;;  %983 = vmatpush.msrb.mxu2 %v346_v28  ;;  %v366_v38 = vld [vmem:[%s2589_s3 + $0x318] sm:$0xff] }
 0x152   : > { %970 = vmatpush.msrb.mxu1 %v320_v7  ;;  %952 = vmatpush.msrb.mxu0 %v299_v39  ;;  %v372_v7 = vld [vmem:[%s2589_s3 + $0x348] sm:$0xff]  ;;  %v379_v39 = vld [vmem:[%s2589_s3 + $0x380] sm:$0xff] }
 0x153   : > { %984 = vmatpush.msrb.mxu2 %v345_v32  ;;  %1006 = vmatpush.msrb.mxu3 %v362_v41  ;;  %v351_v32 = vld [vmem:[%s2589_s3 + $0x2a0] sm:$0xff]  ;;  %v365_v41 = vld [vmem:[%s2589_s3 + $0x310] sm:$0xff] }
 0x154   : > { %971 = vmatpush.msrb.mxu1 %v319_v11  ;;  %1029 = vmatpush.msra.mxu0 %v378_v42  ;;  %v336_v11 = vld [vmem:[%s2589_s3 + $0x228] sm:$0xff] }
 0x155   : > { %985 = vmatpush.msrb.mxu2 %v344_v36  ;;  %1007 = vmatpush.msrb.mxu3 %v361_v45  ;;  %v331_v36 = vld [vmem:[%s2589_s3 + $0x200] sm:$0xff] }
 0x156   : > { %972 = vmatpush.msrb.mxu1 %v318_v15  ;;  %1030 = vmatpush.msra.mxu0 %v377_v46  ;;  %v384_v15 = vld [vmem:[%s2589_s3 + $0x3a8] sm:$0xff] }
 0x157   : > { %986 = vmatpush.msrb.mxu2 %v343_v40  ;;  %1008 = vmatpush.msrb.mxu3 %v360_v49  ;;  %v349_v40 = vld [vmem:[%s2589_s3 + $0x290] sm:$0xff] }
 0x158   : > { %973 = vmatpush.msrb.mxu1 %v317_v19  ;;  %1031 = vmatpush.msra.mxu0 %v376_v50  ;;  %v383_v19 = vld [vmem:[%s2589_s3 + $0x3a0] sm:$0xff] }
 0x159   : > { %987 = vmatpush.msrb.mxu2 %v342_v44  ;;  %1009 = vmatpush.msrb.mxu3 %v359_v54  ;;  %v364_v44 = vld [vmem:[%s2589_s3 + $0x308] sm:$0xff] }
 0x15a   : > { %974 = vmatpush.msrb.mxu1 %v316_v23  ;;  %1032 = vmatpush.msra.mxu0 %v375_v55  ;;  %v382_v23 = vld [vmem:[%s2589_s3 + $0x398] sm:$0xff] }
 0x15b   : > { %988 = vmatpush.msrb.mxu2 %v341_v48  ;;  %1010 = vmatpush.msrb.mxu3 %v358_v59  ;;  %v363_v48 = vld [vmem:[%s2589_s3 + $0x300] sm:$0xff]  ;;  %v1741_v59 = vmov 6  }
 0x15c   : > { %975 = vmatpush.msrb.mxu1 %v315_v27  ;;  %1033 = vmatpush.msra.mxu0 %v374_v60  ;;  %v368_v27 = vld [vmem:[%s2589_s3 + $0x328] sm:$0xff] }
 0x15d   : > { %989 = vmatpush.msrb.mxu2 %v340_v53  ;;  %1011 = vmatpush.msrb.mxu3 %v357_v63 }
 0x15e   : > { %1052 = vmatpush.msra.mxu1 %v394_v29  ;;  %1034 = vmatpush.msra.mxu0 %v373_v2  ;;  %v381_v29 = vld [vmem:[%s2589_s3 + $0x390] sm:$0xff] }
 0x15f   : > { %990 = vmatpush.msrb.mxu2 %v339_v58  ;;  %1012 = vmatpush.msrb.mxu3 %v356_v6  ;;  %v1740_v58 = vmov 8  }
 0x160   : > { %1053 = vmatpush.msra.mxu1 %v393_v33  ;;  %1035 = vmatpush.msra.mxu0 %v372_v7  ;;  %v367_v33 = vld [vmem:[%s2589_s3 + $0x320] sm:$0xff]  ;;  %v1743_v7 = vmov 7  }
 0x161   : > { %991 = vmatpush.msrb.mxu2 %v338_v62  ;;  %1013 = vmatpush.msrb.mxu3 %v355_v12 }
 0x162   : > { %1054 = vmatpush.msra.mxu1 %v392_v37  ;;  %1036 = vmatpush.msra.mxu0 %v371_v13  ;;  %v350_v37 = vld [vmem:[%s2589_s3 + $0x298] sm:$0xff] }
 0x163   : > { %992 = vmatpush.msrb.mxu2 %v337_v5  ;;  %1014 = vmatpush.msrb.mxu3 %v354_v17  ;;  %v1742_v5 = vmov 9  }
 0x164   : > { %1055 = vmatpush.msra.mxu1 %v391_v43  ;;  %1037 = vmatpush.msra.mxu0 %v370_v18  ;;  %v348_v43 = vld [vmem:[%s2589_s3 + $0x288] sm:$0xff] }
 0x165   : > { %993 = vmatpush.msrb.mxu2 %v336_v11  ;;  %1015 = vmatpush.msrb.mxu3 %v353_v21 }
 0x166   : > { %1056 = vmatpush.msra.mxu1 %v390_v47  ;;  %1038 = vmatpush.msra.mxu0 %v369_v22  ;;  %v347_v47 = vld [vmem:[%s2589_s3 + $0x280] sm:$0xff] }
 0x167   : > { %994 = vmatpush.msrb.mxu2 %v335_v16  ;;  %1016 = vmatpush.msrb.mxu3 %v352_v26  ;;  %v1112_v26 = vlaneseq }
 0x168   : > { %1057 = vmatpush.msra.mxu1 %v389_v51  ;;  %1039 = vmatpush.msra.mxu0 %v368_v27 }
 0x169   : > { %995 = vmatpush.msrb.mxu2 %v334_v20  ;;  %1017 = vmatpush.msrb.mxu3 %v351_v32  ;;  %v1161_v27 = vshrl.u32 %v1112_v26, 7  ;;  %v1201_v32 = vperm.slane %v1827_v0, 6 }
 0x16a   : > { %1058 = vmatpush.msra.mxu1 %v388_v57  ;;  %1040 = vmatpush.msra.mxu0 %v367_v33  ;;  %v1159_v33 = vperm.slane %v1827_v0, 0 }
 0x16b   : > { %996 = vmatpush.msrb.mxu2 %v333_v25  ;;  %1018 = vmatpush.msrb.mxu3 %v350_v37  ;;  %v1208_v37 = vperm.slane %v1827_v0, 7 }
 0x16c   : > { %1059 = vmatpush.msra.mxu1 %v387_v61  ;;  %1041 = vmatpush.msra.mxu0 %v366_v38  ;;  %v1222_v38 = vperm.slane %v1830_v1, 1 }
 0x16d   : > { %997 = vmatpush.msrb.mxu2 %v332_v31  ;;  %1019 = vmatpush.msrb.mxu3 %v349_v40  ;;  %v1187_v31 = vperm.slane %v1827_v0, 4  ;;  %v401_v40 = vld [vmem:[%s2590_s4 + $0x28] sm:$0xff] }
 0x16e   : > { %1060 = vmatpush.msra.mxu1 %v386_v3  ;;  %1042 = vmatpush.msra.mxu0 %v365_v41  ;;  %v400_v41 = vld [vmem:[%s2590_s4 + $0x20] sm:$0xff] }
 0x16f   : > { %998 = vmatpush.msrb.mxu2 %v331_v36  ;;  %1020 = vmatpush.msrb.mxu3 %v348_v43  ;;  %v402_v36 = vld [vmem:[%s2590_s4 + $0x30] sm:$0xff] }
 0x170   : > { %1061 = vmatpush.msra.mxu1 %v385_v9  ;;  %1043 = vmatpush.msra.mxu0 %v364_v44  ;;  %v398_v44 = vld [vmem:[%s2590_s4 + $0x10] sm:$0xff] }
 0x171   : > { %1021 = vmatpush.msrb.mxu3 %v347_v47  ;;  %1663 = vset.pattern.permute.xlu1 %v1740_v58  ;;  %v1194_v47 = vperm.slane %v1827_v0, 5 }
 0x172   : > { %1062 = vmatpush.msra.mxu1 %v384_v15  ;;  %1044 = vmatpush.msra.mxu0 %v363_v48  ;;  %v397_v48 = vld [vmem:[%s2590_s4 + $0x8] sm:$0xff] }
 0x173   : > { %1134 = vperm.xlu1 %1663, %v1827_v0   ;;  %1665 = vset.pattern.permute.xlu2 %v1741_v59 }
 0x174   : > { %1063 = vmatpush.msra.mxu1 %v383_v19  ;;  %1667 = vset.pattern.permute.xlu0 %v1740_v58 }
 0x175   : > { %1116 = vperm.xlu2 %1665, %v1827_v0   ;;  %1138 = vperm.xlu0 %1667, %v1830_v1  }
 0x176   : > { %1064 = vmatpush.msra.mxu1 %v382_v23 }
 0x178   : > { %1065 = vmatpush.msra.mxu1 %v381_v29  ;;  %v1173_v29 = vperm.slane %v1827_v0, 2 }
 0x17a   : > { %1066 = vmatpush.msra.mxu1 %v380_v35  ;;  %v403_v35 = vld [vmem:[%s2590_s4 + $0x38] sm:$0xff] }
 0x17b   : > { %1664 = vset.pattern.permute.xlu1 %v1742_v5  ;;  %v1257_v5 = vperm.slane %v1830_v1, 6 }
 0x17c   : > { %1067 = vmatpush.msra.mxu1 %v379_v39  ;;  %1142 = vperm.xlu1 %1664, %v1827_v0   ;;  %v1180_v39 = vperm.slane %v1827_v0, 3 }
 0x17d   : > { %1666 = vset.pattern.permute.xlu2 %v1743_v7 }
 0x17e   : > { %1124 = vperm.xlu2 %1666, %v1827_v0  }
 0x184   : > { %1146 = vperm.xlu1 %1664, %v1830_v1  }
 0x186   : > { %v2221_v52 = vpop.f32.mrf.mxu1  ;;  %1668 = vset.pattern.permute.xlu2 %v1741_v59 }
 0x187   : > { %v2232_v56 = vpop.f32.mrf.mxu0  ;;  %1120 = vperm.xlu2 %1668, %v1830_v1  }
 0x18c   : > { %v2261_v4 = vpop.f32.mrf.mxu2  ;;  %1669 = vset.pattern.permute.xlu1 %v1743_v7 }
 0x18d   : > { %v2272_v8 = vpop.f32.mrf.mxu3  ;;  %1128 = vperm.xlu1 %1669, %v1830_v1  }
 0x18e   : > { %v2277_v10 = vpop.f32.mrf.mxu1 }
 0x18f   : > { %v2288_v14 = vpop.f32.mrf.mxu0 }
 0x194   : > { %v2317_v24 = vpop.f32.mrf.mxu2 }
 0x195   : > { %v2328_v28 = vpop.f32.mrf.mxu3 }
 0x196   : > { %v2333_v30 = vpop.f32.mrf.mxu1 }
 0x197   : > { %v2344_v34 = vpop.f32.mrf.mxu0 }
 0x19c   : > { %v583_v42 = vpop.f32.mrf.mxu2 }
 0x19d   : > { %v606_v45 = vpop.f32.mrf.mxu3 }
 0x19e   : > { %v563_v46 = vpop.f32.mrf.mxu1 }
 0x19f   : > { %v632_v49 = vpop.f32.mrf.mxu0 }
 0x1a4   : > { %v2379_v50 = vpop.f32.mrf.mxu2 }
 0x1a5   : > { %v2381_v51 = vpop.f32.mrf.mxu3 }
 0x1a6   : > { %v682_v53 = vpop.f32.mrf.mxu1 }
 0x1a7   : > { %v849_v54 = vmul.f32 %v682_v53, %v2221_v52  ;;  %v751_v55 = vpop.f32.mrf.mxu0  ;;  %v1250_v53 = vperm.slane %v1830_v1, 5 }
 0x1a8   : > { %v852_v57 = vmul.f32 %v751_v55, %v2232_v56 }
 0x1a9   : > { %907 = vmatmul.f32.vlgmr.msra.gmra.mxu2 %v849_v54  ;;  %v1215_v54 = vperm.slane %v1830_v1, 0 }
 0x1aa   : > { %976 = vmatmul.f32.vlgmr.msrb.gmra.mxu1 %v852_v57  ;;  %1097 = vmatpush.msra.mxu2 %v403_v35 }
 0x1ac   : > { %v705_v60 = vpop.f32.mrf.mxu2  ;;  %1098 = vmatpush.msra.mxu2 %v402_v36 }
 0x1ad   : > { %v850_v61 = vmul.f32 %v705_v60, %v2261_v4  ;;  %v728_v52 = vpop.f32.mrf.mxu3  ;;  %v1236_v60 = vperm.slane %v1830_v1, 3 }
 0x1ae   : > { %v851_v62 = vmul.f32 %v728_v52, %v2272_v8  ;;  %v685_v56 = vpop.f32.mrf.mxu1  ;;  %1099 = vmatpush.msra.mxu2 %v401_v40  ;;  %v409_v40 = vld [vmem:[%s2590_s4 + $0x68] sm:$0x7] }
 0x1af   : > { %v857_v63 = vmul.f32 %v685_v56, %v2277_v10  ;;  %v754_v2 = vpop.f32.mrf.mxu0  ;;  %930 = vmatmul.f32.vlgmr.msra.gmra.mxu3 %v850_v61 }
 0x1b0   : > { %v860_v3 = vmul.f32 %v754_v2, %v2288_v14  ;;  %953 = vmatmul.f32.vlgmr.msrb.gmra.mxu0 %v851_v62  ;;  %1100 = vmatpush.msra.mxu2 %v400_v41 }
 0x1b1   : > { %910 = vmatmul.f32.gmra.mxu2 %v857_v63  ;;  %1611 = vmatpush.msk.msra.mxu3 %vm1421_vm7, %v409_v40 }
 0x1b2   : > { %979 = vmatmul.f32.gmra.mxu1 %v860_v3 }
 0x1b4   : > { %v708_v6 = vpop.f32.mrf.mxu2 }
 0x1b5   : > { %v858_v4 = vmul.f32 %v708_v6, %v2317_v24  ;;  %v731_v8 = vpop.f32.mrf.mxu3 }
 0x1b6   : > { %v859_v9 = vmul.f32 %v731_v8, %v2328_v28  ;;  %v774_v10 = vpop.f32.mrf.mxu1  ;;  %v1162_v28 = vadd.s32 10, %v1161_v27 }
 0x1b7   : > { %v853_v11 = vmul.f32 %v774_v10, %v2333_v30  ;;  %v843_v12 = vpop.f32.mrf.mxu0  ;;  %933 = vmatmul.f32.gmra.mxu3 %v858_v4  ;;  %v1166_v30 = vperm.slane %v1827_v0, 1  ;;  %v1264_v0 = vperm.slane %v1830_v1, 7 }
 0x1b8   : > { %v856_v13 = vmul.f32 %v843_v12, %v2344_v34  ;;  %956 = vmatmul.f32.gmra.mxu0 %v859_v9  ;;  %1672 = vset.pattern.permute.xlu1 %v1162_v28 }
 0x1b9   : > { %999 = vmatmul.f32.vlgmr.msrb.gmra.mxu2 %v853_v11  ;;  %1671 = vset.pattern.permute.xlu0 %v1162_v28 }
 0x1ba   : > { %1068 = vmatmul.f32.vlgmr.msra.gmra.mxu1 %v856_v13  ;;  %1670 = vset.pattern.permute.xlu2 %v1162_v28 }
 0x1bc   : > { %v797_v14 = vpop.f32.mrf.mxu2 }
 0x1bd   : > { %v854_v15 = vmul.f32 %v797_v14, %v583_v42  ;;  %v820_v16 = vpop.f32.mrf.mxu3  ;;  %v399_v42 = vld [vmem:[%s2590_s4 + $0x18] sm:$0xff] }
 0x1be   : > { %v855_v17 = vmul.f32 %v820_v16, %v606_v45  ;;  %v777_v18 = vpop.f32.mrf.mxu1  ;;  %1101 = vmatpush.msra.mxu2 %v399_v42  ;;  %v1229_v45 = vperm.slane %v1830_v1, 2 }
 0x1bf   : > { %v861_v19 = vmul.f32 %v777_v18, %v563_v46  ;;  %v846_v20 = vpop.f32.mrf.mxu0  ;;  %1022 = vmatmul.f32.vlgmr.msrb.gmra.mxu3 %v854_v15  ;;  %v1243_v46 = vperm.slane %v1830_v1, 4 }
 0x1c0   : > { %v864_v21 = vmul.f32 %v846_v20, %v632_v49  ;;  %1045 = vmatmul.f32.vlgmr.msra.gmra.mxu0 %v855_v17  ;;  %1178 = vperm.xlu1 %1672, %v1173_v29   ;;  %v396_v49 = vld [vmem:[%s2590_s4] sm:$0xff] }
 0x1c1   : > { %1002 = vmatmul.f32.gmra.mxu2 %v861_v19  ;;  %1171 = vperm.xlu0 %1671, %v1166_v30  }
 0x1c2   : > { %1071 = vmatmul.f32.gmra.mxu1 %v864_v21  ;;  %1164 = vperm.xlu2 %1670, %v1159_v33  }
 0x1c3   : > { %1102 = vmatpush.msra.mxu2 %v398_v44  ;;  %v408_v44 = vld [vmem:[%s2590_s4 + $0x60] sm:$0xff] }
 0x1c4   : > { %v800_v22 = vpop.f32.mrf.mxu2  ;;  %1460 = vmatpush.msrb.mxu3 %v408_v44 }
 0x1c5   : > { %v862_v23 = vmul.f32 %v800_v22, %v2379_v50  ;;  %v823_v24 = vpop.f32.mrf.mxu3  ;;  %1103 = vmatpush.msra.mxu2 %v397_v48  ;;  %v405_v48 = vld [vmem:[%s2590_s4 + $0x48] sm:$0xff] }
 0x1c6   : > { %v863_v25 = vmul.f32 %v823_v24, %v2381_v51  ;;  %v885_v34 = vpop.f32.mrf.mxu1 }
 0x1c7   : > { %1025 = vmatmul.f32.gmra.mxu3 %v862_v23  ;;  %1104 = vmatpush.msra.mxu2 %v396_v49 }
 0x1c8   : > { %1048 = vmatmul.f32.gmra.mxu0 %v863_v25  ;;  %1192 = vperm.xlu1 %1672, %v1187_v31  }
 0x1c9   : > { %1206 = vperm.xlu0 %1671, %v1201_v32  }
 0x1ca   : > { %1185 = vperm.xlu2 %1670, %v1180_v39  }
 0x1ce   : > { %v888_v43 = vpop.f32.mrf.mxu1 }
 0x1cf   : > { %v1117_v28 = vpop.permute.xlu2 %1116 }
 0x1d0   : > { %1213 = vperm.xlu1 %1672, %v1208_v37  }
 0x1d1   : > { %1227 = vperm.xlu0 %1671, %v1222_v38  }
 0x1d2   : > { %1199 = vperm.xlu2 %1670, %v1194_v47   ;;  %v406_v47 = vld [vmem:[%s2590_s4 + $0x50] sm:$0xff] }
 0x1d8   : > { %1234 = vperm.xlu1 %1672, %v1229_v45   ;;  %v1125_v30 = vpop.permute.xlu2 %1124  ;;  %v1674_v45 = vld [vmem:[%s1836_s14] sm:$0xff] }
 0x1d9   : > { %1248 = vperm.xlu0 %1671, %v1243_v46   ;;  %1612 = vmatmul.msk.f32.vlgmr.msra.gmra.mxu3 %vm1417_vm8, %v1674_v45  ;;  %v407_v46 = vld [vmem:[%s2590_s4 + $0x58] sm:$0xff] }
 0x1da   : > { %1220 = vperm.xlu2 %1670, %v1215_v54   ;;  %1461 = vmatpush.msrb.mxu3 %v407_v46 }
 0x1dc   : > { %1462 = vmatpush.msrb.mxu3 %v406_v47 }
 0x1de   : > { %1463 = vmatpush.msrb.mxu3 %v405_v48 }
 0x1e0   : > { %1255 = vperm.xlu1 %1672, %v1250_v53  }
 0x1e1   : > { %1269 = vperm.xlu0 %1671, %v1264_v0   ;;  %v1121_v32 = vpop.permute.xlu2 %1120 }
 0x1e2   : > { %1241 = vperm.xlu2 %1670, %v1236_v60  }
 0x1e5   : > { %v1135_v29 = vpop.permute.xlu1 %1134 }
 0x1e7   : > { %v1139_v36 = vpop.permute.xlu0 %1138 }
 0x1ea   : > { %1262 = vperm.xlu2 %1670, %v1257_v5  }
 0x1ee   : > { %v1143_v31 = vpop.permute.xlu1 %1142 }
 0x1f6   : > { %v1147_v33 = vpop.permute.xlu1 %1146 }
 0x1ff   : > { %v1129_v35 = vpop.permute.xlu1 %1128 }
 0x227   : > { %v977_v55 = vpop.f32.mrf.mxu1 }
 0x22c   : > { %v908_v50 = vpop.f32.mrf.mxu2 }
 0x22d   : > { %v954_v51 = vpop.f32.mrf.mxu0  ;;  %v909_v59 = vadd.f32 %v908_v50, %v885_v34  ;;  %v2444_v34 = vpop.permute.xlu2 %1164 }
 0x22e   : > { %vm1271_vm10 = vcmp.gt.f32.partialorder %v2444_v34, 0.5 }
 0x22f   : > { %v980_v62 = vpop.f32.mrf.mxu1 }
 0x232   : > { %v931_v57 = vpop.f32.mrf.mxu3  ;;  %v2448_v38 = vpop.permute.xlu1 %1178 }
 0x233   : > { %v932_v61 = vadd.f32 %v931_v57, %v909_v59  ;;  %v2450_v39 = vpop.permute.xlu0 %1171  ;;  %v1673_v57 = vld [vmem:[%s2590_s4 + $0x40] ss:$0 sm:$0xff]  ;;  %vm1273_vm12 = vcmp.gt.f32.partialorder %v2448_v38, 0.5 }
 0x234   : > { %v911_v58 = vpop.f32.mrf.mxu2  ;;  %vm1272_vm13 = vcmp.gt.f32.partialorder %v2450_v39, 0.5 }
 0x235   : > { %v957_v52 = vpop.f32.mrf.mxu0  ;;  %v955_v63 = vadd.f32 %v954_v51, %v932_v61  ;;  %v912_v3 = vadd.f32 %v911_v58, %v888_v43  ;;  %v2446_v37 = vpop.permute.xlu2 %1185  ;;  %v1113_v51 = vand.u32 127, %v1112_v26 }
 0x236   : > { %vm1274_vm11 = vcmp.gt.f32.partialorder %v2446_v37, 0.5 }
 0x237   : > { %v978_v7 = vadd.f32 %v977_v55, %v955_v63  ;;  %v1069_v12 = vpop.f32.mrf.mxu1  ;;  %vm1114_vm9 = vcmp.lt.s32.totalorder %v1113_v51, 16 }
 0x238   : > { %v1149_v0 = vsel %vm1114_vm9, %v1135_v29, %v1143_v31  ;;  %v1150_v54 = vsel %vm1114_vm9, %v1139_v36, %v1147_v33 }
 0x239   : > { %v1153_v59 = vsub.f32 1.0, %v1149_v0  ;;  %v1154_v61 = vsub.f32 1.0, %v1150_v54 }
 0x23a   : > { %v934_v56 = vpop.f32.mrf.mxu3  ;;  %v2457_v42 = vpop.permute.xlu1 %1192 }
 0x23b   : > { %v935_v6 = vadd.f32 %v934_v56, %v912_v3  ;;  %v2459_v43 = vpop.permute.xlu0 %1206  ;;  %v1155_v56 = vmul.f32 65536.0, %v1153_v59  ;;  %v1156_v3 = vmul.f32 65536.0, %v1154_v61  ;;  %vm1275_vm15 = vcmp.gt.f32.partialorder %v2457_v42, 0.5 }
 0x23c   : > { %v1000_v2 = vpop.f32.mrf.mxu2  ;;  %vm1277_vm0 = vcmp.gt.f32.partialorder %v2459_v43, 0.5 }
 0x23d   : > { %v1001_v4 = vadd.f32 %v1000_v2, %v978_v7  ;;  %v1046_v8 = vpop.f32.mrf.mxu0  ;;  %v958_v10 = vadd.f32 %v957_v52, %v935_v6  ;;  %v2455_v41 = vpop.permute.xlu2 %1199  ;;  %v1132_v2 = vsel %vm1114_vm9, %v1121_v32, %v1129_v35 }
 0x23e   : > { %vm1276_vm14 = vcmp.gt.f32.partialorder %v2455_v41, 0.5 }
 0x23f   : > { %v981_v16 = vadd.f32 %v980_v62, %v958_v10  ;;  %v1072_v23 = vpop.f32.mrf.mxu1  ;;  %v1131_v62 = vsel %vm1114_vm9, %v1117_v28, %v1125_v30 }
 0x242   : > { %v1023_v9 = vpop.f32.mrf.mxu3  ;;  %v2476_v50 = vpop.permute.xlu1 %1213 }
 0x243   : > { %v1024_v11 = vadd.f32 %v1023_v9, %v1001_v4  ;;  %v2479_v53 = vpop.permute.xlu0 %1227  ;;  %vm1278_vm1 = vcmp.gt.f32.partialorder %v2476_v50, 0.5 }
 0x244   : > { %v1003_v14 = vpop.f32.mrf.mxu2 }
 0x245   : > { %v1047_v13 = vadd.f32 %v1046_v8, %v1024_v11  ;;  %v1004_v18 = vadd.f32 %v1003_v14, %v981_v16  ;;  %v1049_v21 = vpop.f32.mrf.mxu0  ;;  %v2474_v49 = vpop.permute.xlu2 %1220 }
 0x246   : > { %vm1279_vm3 = vcmp.gt.f32.partialorder %v2474_v49, 0.5 }
 0x247   : > { %v1070_v15 = vadd.f32 %v1069_v12, %v1047_v13 }
 0x249   : > { %v1077_v17 = vmul.f32 0.01, %v1070_v15  ;;  %vm1075_vm4 = vcmp.gt.f32.partialorder %v1070_v15, 0.0 }
 0x24a   : > { %v1026_v19 = vpop.f32.mrf.mxu3  ;;  %v2486_v58 = vpop.permute.xlu1 %1234 }
 0x24b   : > { %v1027_v20 = vadd.f32 %v1026_v19, %v1004_v18  ;;  %v1079_v1 = vsel %vm1075_vm4, %v1070_v15, %v1077_v17  ;;  %v2488_v60 = vpop.permute.xlu0 %1248  ;;  %vm1280_vm4 = vcmp.gt.f32.partialorder %v2479_v53, 0.5 }
 0x24c   : > { %1609 = vmatmul.msk.f32.vlgmr.msra.gmra.mxu2 %vm1082_vm5, %v1079_v1  ;;  %vm1283_vm7 = vcmp.gt.f32.partialorder %v2488_v60, 0.5 }
 0x24d   : > { %v1050_v22 = vadd.f32 %v1049_v21, %v1027_v20  ;;  %v2481_v55 = vpop.permute.xlu2 %1241 }
 0x24f   : > { %v1073_v24 = vadd.f32 %v1072_v23, %v1050_v22 }
 0x251   : > { %vm1076_vm6 = vcmp.gt.f32.partialorder %v1073_v24, 0.0  ;;  %v1078_v25 = vmul.f32 0.01, %v1073_v24 }
 0x252   : > { %v1256_v10 = vpop.permute.xlu1 %1255 }
 0x253   : > { %v1080_v27 = vsel %vm1076_vm6, %v1073_v24, %v1078_v25  ;;  %v1270_v16 = vpop.permute.xlu0 %1269  ;;  %vm1281_vm6 = vcmp.gt.f32.partialorder %v2486_v58, 0.5  ;;  %vm1284_vm9 = vcmp.gt.f32.partialorder %v1256_v10, 0.5 }
 0x254   : > { %1610 = vmatmul.msk.f32.gmra.mxu2 %vm1082_vm5, %v1080_v27  ;;  %vm1286_vm5 = vcmp.gt.f32.partialorder %v1270_v16, 0.5 }
 0x255   : > { %v2498_v6 = vpop.permute.xlu2 %1262 }
 0x256   : > { %vm1285_vm8 = vcmp.gt.f32.partialorder %v2498_v6, 0.5 }
 0x2cf   : > { %v1106_v52 = vpop.f32.mrf.mxu2 }
 0x2d0   : > { %v1107_v26 = vadd.f32 %v1673_v57, %v1106_v52 }
 0x2d2   : > { %v1151_v63 = vmul.f32 %v1131_v62, %v1107_v26 }
 0x2d4   : > { %v1157_v5 = vsub.f32 %v1151_v63, %v1155_v56 }
 0x2d6   : > { %v1289_v7 = vrot.slane %v1157_v5, 1  ;;  %v1290_v4 = vrot.slane %v1157_v5, 2  ;;  %v1291_v8 = vrot.slane %v1157_v5, 3  ;;  %v1292_v9 = vrot.slane %v1157_v5, 4 }
 0x2d7   : > { %v1109_v11 = vpop.f32.mrf.mxu2  ;;  %v1293_v12 = vrot.slane %v1157_v5, 5  ;;  %v1294_v13 = vrot.slane %v1157_v5, 6  ;;  %v1295_v14 = vrot.slane %v1157_v5, 7  ;;  %v1335_v15 = vperm.slane %v1157_v5, 0 }
 0x2d8   : > { %v1110_v17 = vadd.f32 %v1673_v57, %v1109_v11  ;;  %v1336_v18 = vperm.slane %v1289_v7, 0  ;;  %v1337_v19 = vperm.slane %v1290_v4, 0  ;;  %v1338_v20 = vperm.slane %v1291_v8, 0 }
 0x2d9   : > { %v1339_v1 = vperm.slane %v1292_v9, 0  ;;  %v1340_v21 = vperm.slane %v1293_v12, 0  ;;  %v1341_v22 = vperm.slane %v1294_v13, 0  ;;  %v1342_v23 = vperm.slane %v1295_v14, 0 }
 0x2da   : > { %v1152_v24 = vmul.f32 %v1132_v2, %v1110_v17  ;;  %v1367_v25 = vsel %vm1271_vm10, %v1335_v15, -1e+09  ;;  %v1368_v27 = vsel %vm1272_vm13, %v1336_v18, -1e+09  ;;  %v1369_v28 = vsel %vm1273_vm12, %v1337_v19, -1e+09 }
 0x2db   : > { %v1370_v29 = vsel %vm1274_vm11, %v1338_v20, -1e+09  ;;  %v1371_v30 = vsel %vm1275_vm15, %v1339_v1, -1e+09  ;;  %v1372_v31 = vsel %vm1276_vm14, %v1340_v21, -1e+09 }
 0x2dc   : > { %v1158_v32 = vsub.f32 %v1152_v24, %v1156_v3  ;;  %v1373_v33 = vsel %vm1277_vm0, %v1341_v22, -1e+09  ;;  %v1374_v34 = vsel %vm1278_vm1, %v1342_v23, -1e+09  ;;  %v1384_v35 = vsel %vm1383_vm2, %v1367_v25, -inf  ;;  %v1442_v25 = vpop.f32.mrf.mxu3 }
 0x2dd   : > { %v1385_v36 = vsel %vm1383_vm2, %v1368_v27, -inf  ;;  %v1386_v37 = vsel %vm1383_vm2, %v1369_v28, -inf  ;;  %v1387_v38 = vsel %vm1383_vm2, %v1370_v29, -inf  ;;  %v1388_v39 = vsel %vm1383_vm2, %v1371_v30, -inf }
 0x2de   : > { %v1296_v40 = vrot.slane %v1158_v32, 1  ;;  %v1297_v41 = vrot.slane %v1158_v32, 2  ;;  %v1298_v42 = vrot.slane %v1158_v32, 3  ;;  %v1299_v44 = vrot.slane %v1158_v32, 4 }
 0x2df   : > { %v1300_v45 = vrot.slane %v1158_v32, 5  ;;  %v1301_v43 = vrot.slane %v1158_v32, 6  ;;  %v1302_v46 = vrot.slane %v1158_v32, 7  ;;  %v1343_v47 = vperm.slane %v1158_v32, 0 }
 0x2e0   : > { %v1344_v48 = vperm.slane %v1296_v40, 0  ;;  %v1345_v50 = vperm.slane %v1297_v41, 0  ;;  %v1346_v51 = vperm.slane %v1298_v42, 0  ;;  %v1347_v0 = vperm.slane %v1299_v44, 0 }
 0x2e1   : > { %v1348_v54 = vperm.slane %v1300_v45, 0  ;;  %v1349_v57 = vperm.slane %v1301_v43, 0  ;;  %v1350_v59 = vperm.slane %v1302_v46, 0  ;;  %v1375_v61 = vsel %vm1279_vm3, %v1343_v47, -1e+09 }
 0x2e2   : > { %v1376_v52 = vsel %vm1280_vm4, %v1344_v48, -1e+09  ;;  %v1377_v26 = vsel %vm1281_vm6, %v1345_v50, -1e+09  ;;  %vm2594_vm10 = vcmp.gt.f32.partialorder %v2481_v55, 0.5  ;;  %v1389_v3 = vmax.f32 %v1384_v35, %v1388_v39 }
 0x2e3   : > { %v1378_v62 = vsel %vm2594_vm10, %v1346_v51, -1e+09  ;;  %v1379_v56 = vsel %vm1283_vm7, %v1347_v0, -1e+09  ;;  %v1380_v63 = vsel %vm1284_vm9, %v1348_v54, -1e+09 }
 0x2e4   : > { %v1381_v2 = vsel %vm1285_vm8, %v1349_v57, -1e+09  ;;  %v1382_v49 = vsel %vm1286_vm5, %v1350_v59, -1e+09  ;;  %v1390_v53 = vsel %vm1383_vm2, %v1372_v31, -inf  ;;  %v1392_v5 = vsel %vm1383_vm2, %v1373_v33, -inf }
 0x2e5   : > { %v1394_v58 = vsel %vm1383_vm2, %v1374_v34, -inf  ;;  %v1391_v7 = vmax.f32 %v1385_v36, %v1390_v53  ;;  %v1393_v55 = vmax.f32 %v1386_v37, %v1392_v5  ;;  %v1396_v60 = vsel %vm1383_vm2, %v1375_v61, -inf }
 0x2e6   : > { %v1395_v4 = vmax.f32 %v1387_v38, %v1394_v58  ;;  %v1397_v8 = vmax.f32 %v1389_v3, %v1396_v60  ;;  %v1398_v9 = vsel %vm1383_vm2, %v1376_v52, -inf  ;;  %v1400_v6 = vsel %vm1383_vm2, %v1377_v26, -inf }
 0x2e7   : > { %v1402_v10 = vsel %vm1383_vm2, %v1378_v62, -inf  ;;  %v1399_v11 = vmax.f32 %v1391_v7, %v1398_v9  ;;  %v1401_v12 = vmax.f32 %v1393_v55, %v1400_v6  ;;  %v1404_v14 = vsel %vm1383_vm2, %v1379_v56, -inf }
 0x2e8   : > { %v1403_v13 = vmax.f32 %v1395_v4, %v1402_v10  ;;  %v1406_v15 = vsel %vm1383_vm2, %v1380_v63, -inf  ;;  %v1408_v16 = vsel %vm1383_vm2, %v1381_v2, -inf  ;;  %v1410_v17 = vsel %vm1383_vm2, %v1382_v49, -inf }
 0x2e9   : > { %v1405_v18 = vmax.f32 %v1397_v8, %v1404_v14  ;;  %v1407_v19 = vmax.f32 %v1399_v11, %v1406_v15  ;;  %v1409_v20 = vmax.f32 %v1401_v12, %v1408_v16 }
 0x2ea   : > { %v1411_v1 = vmax.f32 %v1403_v13, %v1410_v17 }
 0x2eb   : > { %v1412_v21 = vmax.f32 %v1405_v18, %v1407_v19 }
 0x2ec   : > { %v1413_v22 = vmax.f32 %v1409_v20, %v1411_v1 }
 0x2ee   : > { %v1414_v23 = vmax.f32 %v1412_v21, %v1413_v22 }
 0x2f0   : > { %vm1415_vm11 = vcmp.gt.f32.partialorder %v1414_v23, -32768.0 }
 0x2f1   : > { %v1416_v24 = vsel %vm1415_vm11, %v1414_v23, 0.0 }
 0x2f2   : > { %1613 = vmatmul.msk.f32.vlgmr.msrb.gmra.mxu3 %vm1383_vm2, %v1416_v24 }
 0x375   : > { %v1465_v27 = vpop.f32.mrf.mxu3 }
 0x376   : > { %v1466_v28 = vadd.f32 %v1465_v27, %v1442_v25 }
 0x378   : > { %1468 = vst.msk [vmem:[%s230_s8] sm:$0xff] %vm1383_vm2, %v1466_v28 }
 0x379   : > { %1702 = shalt.err (!%p1699_p3)
}
 0x37a   : > { %1619 = dma.vmem_to_hbm [thread:$0]  (%p1812_p5), %s1483_s9, 128, %s1485_s10, %s1470_s11  }
 0x37b PF: > { %p1625_p4 = scmp.ge.s32.totalorder %s1737_s21, 2  ;;  %s1496_s23 = sand.u32 1, %s1725_s18  }
 0x37c   : > { %s1497_s25 = scalar_lea.sflag [#allocation3], %s1496_s23 }
 0x37d   : > { %p1622_p7 = pnand %p1625_p4, %p1816_p6 }
 0x37f   : > { %p1623_p8 = pneg %p1622_p7 }
 0x381   : > { %1720 = dma.done.wait (%p1623_p8), %s1497_s25, 128  }
 0x382   : > { %1722 = vsyncadd (%p1623_p8), %s1497_s25, 4294967168  ;;  %p15_p9 = scmp.ge.s32.totalorder %s1799_s24, 4   ;;  %s2595_s18 = smov %s1729_s19 }
 0x383   : > { %s2596_s19 = smov %s1733_s20  ;;  %s2597_s20 = smov %s1810_s27 }
 0x384   : > { %s2598_s21 = smov %s1799_s24  ;;  %17 = sbr.rel (!%p15_p9) target bundleno = 3 (0x3), region = 78 }
 0x389   :  { %1503 = vsyncpa [#allocation3], 1 }
 0x38a   :  { %1505 = vsyncpa [#allocation3 + $0x1], 1 }

</bundles_post_ra>
